<compile_context>
chip_gen: v5e
topology: v5e:2x2
jax: 0.10.0
libtpu: 0.0.40
codegen_flags: <defaults>
</compile_context>

<pallas_src>
import functools

import jax
import jax.numpy as jnp
from jax.experimental import pallas as pl
from jax.experimental.pallas import tpu as pltpu

# ConvTranspose2d(kernel=4, stride=2, padding=1) sub-pixel decomposition.
# For output row 2p+r, the contributing (1-padded) input rows / kernel taps:
#   r=0 : padded rows (p,   p+1) with kh = (3, 1)
#   r=1 : padded rows (p+1, p+2) with kh = (2, 0)
_OFF = ((0, 1), (1, 2))     # offsets into the padded input, per phase r
_KTAP = ((3, 1), (2, 0))    # matching kernel taps, per phase r
_N_PHASE = 4                # (rh, rw) in {0,1}^2


def _round_up(x, m):
    return ((x + m - 1) // m) * m


def _make_kernel(c_ann, c_idx, c_total, apply_act):
    """Fused (matmul + bias [+ per-phase softmax/sigmoid]) kernel body."""

    def kernel(patch_ref, w_ref, b_ref, out_ref):
        # patch_ref: (tm, 9*Cin) bf16   w_ref: (9*Cin, Cp) bf16
        # b_ref:     (1, Cp)     f32    out_ref: (tm, Cp)  f32
        acc = jnp.dot(patch_ref[...], w_ref[...],
                      preferred_element_type=jnp.float32)
        acc = acc + b_ref[...]                              # (tm, Cp)

        if not apply_act:                                   # training mode
            out_ref[...] = acc.astype(out_ref.dtype)
            return

        lane = jax.lax.broadcasted_iota(jnp.int32, acc.shape, 1)

        # Lane masks for the Ann (softmax) / Index (sigmoid) channel groups
        # of each of the 4 fused sub-pixel phases (pure VPU, no lane slicing).
        ann_mask = jnp.zeros(acc.shape, jnp.bool_)
        idx_mask = jnp.zeros(acc.shape, jnp.bool_)
        for p in range(_N_PHASE):
            base = p * c_total
            ann_mask = jnp.logical_or(
                ann_mask, (lane >= base) & (lane < base + c_ann))
            idx_mask = jnp.logical_or(
                idx_mask,
                (lane >= base + c_ann) & (lane < base + c_ann + c_idx))

        # Stabilise the per-phase softmax with the row-global max over all
        # Ann lanes (a per-row constant => valid for every phase group).
        row_max = jnp.max(jnp.where(ann_mask, acc, jnp.float32(-1e30)),
                          axis=-1, keepdims=True)

        # Single EUP exp pass shared by softmax (Ann) and sigmoid (Index):
        #   Ann lanes   -> exp(acc - row_max)
        #   Index lanes -> exp(-acc)           (sigmoid(x) = 1/(1+exp(-x)))
        arg = jnp.where(ann_mask, acc - row_max,
                        jnp.where(idx_mask, -acc, 0.0))
        arg = jnp.minimum(arg, jnp.float32(80.0))           # overflow guard
        e = jnp.exp(arg)

        # Per-phase softmax denominators, scattered back to full lane width.
        denom = jnp.ones_like(acc)
        for p in range(_N_PHASE):
            base = p * c_total
            in_phase = (lane >= base) & (lane < base + c_total)
            s = jnp.sum(jnp.where(jnp.logical_and(in_phase, ann_mask), e, 0.0),
                        axis=-1, keepdims=True)
            denom = jnp.where(in_phase, s, denom)

        ann_out = e * pl.reciprocal(denom, approx=True)      # EUP, off VALU
        idx_out = pl.reciprocal(1.0 + e, approx=True)        # sigmoid

        out = jnp.where(ann_mask, ann_out, jnp.where(idx_mask, idx_out, acc))
        out_ref[...] = out.astype(out_ref.dtype)

    return kernel


def _build_union_patches(x_nhwc):
    """im2col of the 3x3 padded neighbourhood: (N*H*W, 9*Cin)."""
    N, H, W, Cin = x_nhwc.shape
    xp = jnp.pad(x_nhwc, ((0, 0), (1, 1), (1, 1), (0, 0)))
    cols = [xp[:, dh:dh + H, dw:dw + W, :] for dh in range(3) for dw in range(3)]
    return jnp.concatenate(cols, axis=-1).reshape(N * H * W, 9 * Cin)


def _build_fused_weight(w_all, cp):
    """(9*Cin, Cp) block-sparse weight: tap-major rows, phase-major columns."""
    cin, c_total = w_all.shape[0], w_all.shape[1]
    wf = jnp.zeros((9 * cin, cp), jnp.float32)
    for rh in range(2):
        for rw in range(2):
            phase = rh * 2 + rw
            for j in range(2):
                for l in range(2):
                    dh, dw = _OFF[rh][j], _OFF[rw][l]
                    kh, kw = _KTAP[rh][j], _KTAP[rw][l]
                    tap = dh * 3 + dw
                    wf = wf.at[tap * cin:(tap + 1) * cin,
                               phase * c_total:(phase + 1) * c_total].set(
                                   w_all[:, :, kh, kw])
    return wf


def _build_fused_bias(b_all, cp):
    c_total = b_all.shape[0]
    bf = jnp.zeros((1, cp), jnp.float32)
    for phase in range(_N_PHASE):
        bf = bf.at[0, phase * c_total:(phase + 1) * c_total].set(b_all)
    return bf


def uv_outputs_forward(x_list, w_all, b_all, c_ann, c_idx, tm=512,
                       training=False):
    """UVOutputs forward (spatial_in=[0.5] -> up_scale == 1).

    x_list   : list of NCHW feature maps (only the last is used, as in torch)
    w_all    : (Cin, C_total, 4, 4) fused ConvTranspose2d weights [Ann|Index|U|V]
    b_all    : (C_total,) fused biases
    training : if True, skip softmax/sigmoid (matches `not self.training`)
    Returns [x_Ann, x_Index, x_U, x_V] in NCHW at 2x spatial resolution.
    """
    # TODO(synk): the bilinear F.interpolate branch (up_scale > 1) is not
    # implemented; with spatial_in = [0.5] up_scale == 1 so it never executes.
    x = x_list[-1]
    N, Cin, H, W = x.shape
    c_total = w_all.shape[1]
    assert c_total == c_ann + 3 * c_idx

    # NHWC, bf16 activations/weights; f32 accumulation happens on the MXU.
    x_nhwc = jnp.transpose(x, (0, 2, 3, 1)).astype(jnp.bfloat16)
    patches = _build_union_patches(x_nhwc)                   # (M, 9*Cin) bf16
    # TODO(synk): patches replicate the input 9x in HBM; a fully in-kernel
    # halo'd im2col (manual DMA over pl.ANY refs) would cut input reads
    # further at the cost of significantly more lowering complexity.

    M, K = patches.shape
    cp = _round_up(_N_PHASE * c_total, 128)                  # lane-dense out
    wf = _build_fused_weight(w_all, cp).astype(jnp.bfloat16)  # (K, cp)
    bf = _build_fused_bias(b_all, cp)                         # (1, cp) f32

    tm_eff = min(tm, _round_up(M, 8))
    m_pad = _round_up(M, tm_eff)                             # no dropped tail
    if m_pad != M:
        patches = jnp.pad(patches, ((0, m_pad - M), (0, 0)))

    out = pl.pallas_call(
        _make_kernel(c_ann, c_idx, c_total, apply_act=not training),
        out_shape=jax.ShapeDtypeStruct((m_pad, cp), jnp.float32),
        grid_spec=pltpu.PrefetchScalarGridSpec(
            num_scalar_prefetch=0,
            grid=(m_pad // tm_eff,),                         # 1-D parallel grid
            in_specs=[
                pl.BlockSpec((tm_eff, K), lambda i: (i, 0)),
                pl.BlockSpec((K, cp), lambda i: (0, 0)),     # fetched once
                pl.BlockSpec((1, cp), lambda i: (0, 0)),     # fetched once
            ],
            out_specs=pl.BlockSpec((tm_eff, cp), lambda i: (i, 0)),
        ),
        compiler_params=pltpu.CompilerParams(
            dimension_semantics=("parallel",),
            vmem_limit_bytes=32 * 1024 * 1024),  # safe on v5e/v6e/v7x, >> need
    )(patches, wf, bf)

    # (M, 4*C) -> NCHW with a single transpose pass (phase interleave + NCHW).
    y = out[:M, :_N_PHASE * c_total].reshape(N, H, W, 2, 2, c_total)
    y = jnp.transpose(y, (0, 5, 1, 3, 2, 4)).reshape(N, c_total, 2 * H, 2 * W)

    x_ann = y[:, :c_ann]
    x_index = y[:, c_ann:c_ann + c_idx]
    x_u = y[:, c_ann + c_idx:c_ann + 2 * c_idx]
    x_v = y[:, c_ann + 2 * c_idx:]
    return [x_ann, x_index, x_u, x_v]


# ---------------------------------------------------------------------------
# Reference (pure XLA) ConvTranspose2d(k=4, s=2, p=1) to validate the kernel.
# ---------------------------------------------------------------------------
def _conv_transpose_ref(x_nchw, w, b):
    # torch ConvTranspose2d == dilate input by stride, pad by k-1-p=2, then
    # correlate with the spatially flipped kernel (I/O transposed to OIHW).
    wf = jnp.transpose(w[:, :, ::-1, ::-1], (1, 0, 2, 3))
    y = jax.lax.conv_general_dilated(
        x_nchw, wf, window_strides=(1, 1), padding=((2, 2), (2, 2)),
        lhs_dilation=(2, 2), dimension_numbers=("NCHW", "OIHW", "NCHW"),
        precision=jax.lax.Precision.HIGHEST)
    return y + b[None, :, None, None]


def _kaiming_fan_out(key, cin, cout, k=4):
    # nn.init.kaiming_normal_(mode='fan_out', nonlinearity='relu') on a
    # ConvTranspose2d weight (Cin, Cout, k, k): fan_out = Cin*k*k, gain=sqrt(2)
    std = (2.0 / (cin * k * k)) ** 0.5
    return std * jax.random.normal(key, (cin, cout, k, k), jnp.float32)


if __name__ == "__main__":
    key = jax.random.PRNGKey(0)
    # small config consistent with the module: dim_in=[32], spatial_in=[0.5]
    N, Cin, H, W = 2, 32, 8, 8
    num_parts, num_patches = 7, 7                    # cfg.UV.NUM_PARTS/PATCHES
    c_ann, c_idx = num_parts + 1, num_patches + 1    # 8, 8 -> 4*C_total = 128

    k_ann, k_idx, k_u, k_v, k_x = jax.random.split(key, 5)
    w_ann = _kaiming_fan_out(k_ann, Cin, c_ann)
    w_index = _kaiming_fan_out(k_idx, Cin, c_idx)
    w_u = _kaiming_fan_out(k_u, Cin, c_idx)
    w_v = _kaiming_fan_out(k_v, Cin, c_idx)
    w_all = jnp.concatenate([w_ann, w_index, w_u, w_v], axis=1)  # (Cin,Ct,4,4)
    b_all = jnp.zeros((w_all.shape[1],), jnp.float32)            # bias = 0

    x = jax.random.normal(k_x, (N, Cin, H, W), jnp.float32)      # NCHW input

    fwd = jax.jit(functools.partial(uv_outputs_forward, c_ann=c_ann,
                                    c_idx=c_idx))
    outs = fwd([x], w_all, b_all)
    outs = jax.block_until_ready(outs)

    assert outs[0].shape == (N, c_ann, 2 * H, 2 * W)
    assert outs[1].shape == (N, c_idx, 2 * H, 2 * W)
    assert outs[2].shape == (N, c_idx, 2 * H, 2 * W)
    assert outs[3].shape == (N, c_idx, 2 * H, 2 * W)

    # Numeric check against the XLA ConvTranspose2d reference with the same
    # bf16-rounded inputs (kernel differs only by accumulation order, EUP
    # exp and the approx reciprocals used for softmax/sigmoid).
    x_r = x.astype(jnp.bfloat16).astype(jnp.float32)
    w_r = w_all.astype(jnp.bfloat16).astype(jnp.float32)
    ref = _conv_transpose_ref(x_r, w_r, b_all)
    ref_ann = jax.nn.softmax(ref[:, :c_ann], axis=1)
    ref_idx = jax.nn.sigmoid(ref[:, c_ann:c_ann + c_idx])
    ref_u = ref[:, c_ann + c_idx:c_ann + 2 * c_idx]
    ref_v = ref[:, c_ann + 2 * c_idx:]

    assert bool(jnp.allclose(outs[2], ref_u, rtol=1e-2, atol=1e-2)), "U mismatch"
    assert bool(jnp.allclose(outs[3], ref_v, rtol=1e-2, atol=1e-2)), "V mismatch"
    assert bool(jnp.allclose(outs[0], ref_ann, atol=2e-2)), "Ann mismatch"
    assert bool(jnp.allclose(outs[1], ref_idx, atol=2e-2)), "Index mismatch"
    # softmax over the channel dim sums to ~1 (approx reciprocal tolerance)
    assert bool(jnp.allclose(jnp.sum(outs[0], axis=1), 1.0, atol=1e-2))

    # Training-mode path (no activations): raw ConvTranspose2d outputs.
    fwd_train = jax.jit(functools.partial(uv_outputs_forward, c_ann=c_ann,
                                          c_idx=c_idx, training=True))
    outs_t = jax.block_until_ready(fwd_train([x], w_all, b_all))
    assert bool(jnp.allclose(outs_t[0], ref[:, :c_ann], rtol=1e-2, atol=1e-2)), \
        "train Ann mismatch"
    assert bool(jnp.allclose(outs_t[1], ref[:, c_ann:c_ann + c_idx],
                             rtol=1e-2, atol=1e-2)), "train Index mismatch"

    print("KERNEL_OK")
</pallas_src>

<mosaic_0001>
module attributes {stable_mosaic.version = 11 : i64} {
  func.func @kernel(%arg0: i32, %arg1: memref<128x288xbf16, #tpu.memory_space<vmem>>, %arg2: memref<288x128xbf16, #tpu.memory_space<vmem>>, %arg3: memref<1x128xf32, #tpu.memory_space<vmem>>, %arg4: memref<128x128xf32, #tpu.memory_space<vmem>>) attributes {dimension_semantics = [#tpu.dimension_semantics<parallel>], iteration_bounds = array<i64: 1>, scalar_prefetch = 0 : i64, scratch_operands = 0 : i64, tpu.core_type = #tpu.core_type<tc>, window_params = [{transform_indices = @transform_0, window_bounds = array<i64: 128, 288>}, {pipeline_mode = #tpu.pipeline_mode<synchronous>, transform_indices = @transform_1, window_bounds = array<i64: 288, 128>}, {pipeline_mode = #tpu.pipeline_mode<synchronous>, transform_indices = @transform_2, window_bounds = array<i64: 1, 128>}, {transform_indices = @transform_3, window_bounds = array<i64: 128, 128>}]} {
    %c0 = arith.constant 0 : index
    %c0_0 = arith.constant 0 : index
    %0 = vector.load %arg1[%c0, %c0_0] : memref<128x288xbf16, #tpu.memory_space<vmem>>, vector<128x288xbf16>
    %c0_1 = arith.constant 0 : index
    %c0_2 = arith.constant 0 : index
    %1 = vector.load %arg2[%c0_1, %c0_2] : memref<288x128xbf16, #tpu.memory_space<vmem>>, vector<288x128xbf16>
    %cst = arith.constant dense<0.000000e+00> : vector<128x128xf32>
    %2 = tpu.matmul %0, %1, %cst {dimension_numbers = #tpu.dot_dimension_numbers<[1], [0], [0], [1], [0, 0, 1, 1], [], []>} : vector<128x288xbf16>, vector<288x128xbf16>, vector<128x128xf32> -> vector<128x128xf32>
    %c0_3 = arith.constant 0 : index
    %c0_4 = arith.constant 0 : index
    %3 = vector.load %arg3[%c0_3, %c0_4] : memref<1x128xf32, #tpu.memory_space<vmem>>, vector<1x128xf32>
    %4 = vector.broadcast %3 : vector<1x128xf32> to vector<128x128xf32>
    %5 = arith.addf %2, %4 : vector<128x128xf32>
    %6 = tpu.iota {dimensions = array<i32: 1>} : vector<128x128xi32>
    %false = arith.constant false
    %7 = vector.broadcast %false : i1 to vector<128x128xi1>
    %false_5 = arith.constant false
    %8 = vector.broadcast %false_5 : i1 to vector<128x128xi1>
    %c0_i32 = arith.constant 0 : i32
    %9 = vector.broadcast %c0_i32 : i32 to vector<128x128xi32>
    %10 = arith.cmpi sge, %6, %9 : vector<128x128xi32>
    %c8_i32 = arith.constant 8 : i32
    %11 = vector.broadcast %c8_i32 : i32 to vector<128x128xi32>
    %12 = arith.cmpi slt, %6, %11 : vector<128x128xi32>
    %13 = arith.andi %10, %12 : vector<128x128xi1>
    %14 = arith.ori %7, %13 : vector<128x128xi1>
    %c8_i32_6 = arith.constant 8 : i32
    %15 = vector.broadcast %c8_i32_6 : i32 to vector<128x128xi32>
    %16 = arith.cmpi sge, %6, %15 : vector<128x128xi32>
    %c16_i32 = arith.constant 16 : i32
    %17 = vector.broadcast %c16_i32 : i32 to vector<128x128xi32>
    %18 = arith.cmpi slt, %6, %17 : vector<128x128xi32>
    %19 = arith.andi %16, %18 : vector<128x128xi1>
    %20 = arith.ori %8, %19 : vector<128x128xi1>
    %c32_i32 = arith.constant 32 : i32
    %21 = vector.broadcast %c32_i32 : i32 to vector<128x128xi32>
    %22 = arith.cmpi sge, %6, %21 : vector<128x128xi32>
    %c40_i32 = arith.constant 40 : i32
    %23 = vector.broadcast %c40_i32 : i32 to vector<128x128xi32>
    %24 = arith.cmpi slt, %6, %23 : vector<128x128xi32>
    %25 = arith.andi %22, %24 : vector<128x128xi1>
    %26 = arith.ori %14, %25 : vector<128x128xi1>
    %c40_i32_7 = arith.constant 40 : i32
    %27 = vector.broadcast %c40_i32_7 : i32 to vector<128x128xi32>
    %28 = arith.cmpi sge, %6, %27 : vector<128x128xi32>
    %c48_i32 = arith.constant 48 : i32
    %29 = vector.broadcast %c48_i32 : i32 to vector<128x128xi32>
    %30 = arith.cmpi slt, %6, %29 : vector<128x128xi32>
    %31 = arith.andi %28, %30 : vector<128x128xi1>
    %32 = arith.ori %20, %31 : vector<128x128xi1>
    %c64_i32 = arith.constant 64 : i32
    %33 = vector.broadcast %c64_i32 : i32 to vector<128x128xi32>
    %34 = arith.cmpi sge, %6, %33 : vector<128x128xi32>
    %c72_i32 = arith.constant 72 : i32
    %35 = vector.broadcast %c72_i32 : i32 to vector<128x128xi32>
    %36 = arith.cmpi slt, %6, %35 : vector<128x128xi32>
    %37 = arith.andi %34, %36 : vector<128x128xi1>
    %38 = arith.ori %26, %37 : vector<128x128xi1>
    %c72_i32_8 = arith.constant 72 : i32
    %39 = vector.broadcast %c72_i32_8 : i32 to vector<128x128xi32>
    %40 = arith.cmpi sge, %6, %39 : vector<128x128xi32>
    %c80_i32 = arith.constant 80 : i32
    %41 = vector.broadcast %c80_i32 : i32 to vector<128x128xi32>
    %42 = arith.cmpi slt, %6, %41 : vector<128x128xi32>
    %43 = arith.andi %40, %42 : vector<128x128xi1>
    %44 = arith.ori %32, %43 : vector<128x128xi1>
    %c96_i32 = arith.constant 96 : i32
    %45 = vector.broadcast %c96_i32 : i32 to vector<128x128xi32>
    %46 = arith.cmpi sge, %6, %45 : vector<128x128xi32>
    %c104_i32 = arith.constant 104 : i32
    %47 = vector.broadcast %c104_i32 : i32 to vector<128x128xi32>
    %48 = arith.cmpi slt, %6, %47 : vector<128x128xi32>
    %49 = arith.andi %46, %48 : vector<128x128xi1>
    %50 = arith.ori %38, %49 : vector<128x128xi1>
    %c104_i32_9 = arith.constant 104 : i32
    %51 = vector.broadcast %c104_i32_9 : i32 to vector<128x128xi32>
    %52 = arith.cmpi sge, %6, %51 : vector<128x128xi32>
    %c112_i32 = arith.constant 112 : i32
    %53 = vector.broadcast %c112_i32 : i32 to vector<128x128xi32>
    %54 = arith.cmpi slt, %6, %53 : vector<128x128xi32>
    %55 = arith.andi %52, %54 : vector<128x128xi1>
    %56 = arith.ori %44, %55 : vector<128x128xi1>
    %cst_10 = arith.constant -1.000000e+30 : f32
    %57 = vector.broadcast %cst_10 : f32 to vector<128x128xf32>
    %58 = arith.select %50, %5, %57 : vector<128x128xi1>, vector<128x128xf32>
    %cst_11 = arith.constant dense<0xFF800000> : vector<128xf32>
    %59 = vector.multi_reduction <maximumf>, %58, %cst_11 [1] : vector<128x128xf32> to vector<128xf32>
    %60 = vector.shape_cast %59 : vector<128xf32> to vector<128x1xf32>
    %61 = vector.broadcast %60 : vector<128x1xf32> to vector<128x128xf32>
    %62 = arith.subf %5, %61 : vector<128x128xf32>
    %cst_12 = arith.constant 0.000000e+00 : f32
    %63 = vector.broadcast %cst_12 : f32 to vector<128x128xf32>
    %64 = arith.subf %63, %5 : vector<128x128xf32>
    %cst_13 = arith.constant 0.000000e+00 : f32
    %65 = vector.broadcast %cst_13 : f32 to vector<128x128xf32>
    %66 = arith.select %56, %64, %65 : vector<128x128xi1>, vector<128x128xf32>
    %67 = arith.select %50, %62, %66 : vector<128x128xi1>, vector<128x128xf32>
    %cst_14 = arith.constant 8.000000e+01 : f32
    %68 = vector.broadcast %cst_14 : f32 to vector<128x128xf32>
    %69 = arith.minimumf %67, %68 : vector<128x128xf32>
    %70 = math.exp %69 : vector<128x128xf32>
    %cst_15 = arith.constant 1.000000e+00 : f32
    %71 = vector.broadcast %cst_15 : f32 to vector<128x128xf32>
    %c0_i32_16 = arith.constant 0 : i32
    %72 = vector.broadcast %c0_i32_16 : i32 to vector<128x128xi32>
    %73 = arith.cmpi sge, %6, %72 : vector<128x128xi32>
    %c32_i32_17 = arith.constant 32 : i32
    %74 = vector.broadcast %c32_i32_17 : i32 to vector<128x128xi32>
    %75 = arith.cmpi slt, %6, %74 : vector<128x128xi32>
    %76 = arith.andi %73, %75 : vector<128x128xi1>
    %77 = arith.andi %76, %50 : vector<128x128xi1>
    %cst_18 = arith.constant 0.000000e+00 : f32
    %78 = vector.broadcast %cst_18 : f32 to vector<128x128xf32>
    %79 = arith.select %77, %70, %78 : vector<128x128xi1>, vector<128x128xf32>
    %cst_19 = arith.constant dense<0.000000e+00> : vector<128xf32>
    %80 = vector.multi_reduction <add>, %79, %cst_19 [1] : vector<128x128xf32> to vector<128xf32>
    %81 = vector.shape_cast %80 : vector<128xf32> to vector<128x1xf32>
    %82 = vector.shape_cast %81 : vector<128x1xf32> to vector<128x1xf32>
    %83 = vector.broadcast %82 : vector<128x1xf32> to vector<128x128xf32>
    %84 = arith.select %76, %83, %71 : vector<128x128xi1>, vector<128x128xf32>
    %c32_i32_20 = arith.constant 32 : i32
    %85 = vector.broadcast %c32_i32_20 : i32 to vector<128x128xi32>
    %86 = arith.cmpi sge, %6, %85 : vector<128x128xi32>
    %c64_i32_21 = arith.constant 64 : i32
    %87 = vector.broadcast %c64_i32_21 : i32 to vector<128x128xi32>
    %88 = arith.cmpi slt, %6, %87 : vector<128x128xi32>
    %89 = arith.andi %86, %88 : vector<128x128xi1>
    %90 = arith.andi %89, %50 : vector<128x128xi1>
    %cst_22 = arith.constant 0.000000e+00 : f32
    %91 = vector.broadcast %cst_22 : f32 to vector<128x128xf32>
    %92 = arith.select %90, %70, %91 : vector<128x128xi1>, vector<128x128xf32>
    %cst_23 = arith.constant dense<0.000000e+00> : vector<128xf32>
    %93 = vector.multi_reduction <add>, %92, %cst_23 [1] : vector<128x128xf32> to vector<128xf32>
    %94 = vector.shape_cast %93 : vector<128xf32> to vector<128x1xf32>
    %95 = vector.shape_cast %94 : vector<128x1xf32> to vector<128x1xf32>
    %96 = vector.broadcast %95 : vector<128x1xf32> to vector<128x128xf32>
    %97 = arith.select %89, %96, %84 : vector<128x128xi1>, vector<128x128xf32>
    %c64_i32_24 = arith.constant 64 : i32
    %98 = vector.broadcast %c64_i32_24 : i32 to vector<128x128xi32>
    %99 = arith.cmpi sge, %6, %98 : vector<128x128xi32>
    %c96_i32_25 = arith.constant 96 : i32
    %100 = vector.broadcast %c96_i32_25 : i32 to vector<128x128xi32>
    %101 = arith.cmpi slt, %6, %100 : vector<128x128xi32>
    %102 = arith.andi %99, %101 : vector<128x128xi1>
    %103 = arith.andi %102, %50 : vector<128x128xi1>
    %cst_26 = arith.constant 0.000000e+00 : f32
    %104 = vector.broadcast %cst_26 : f32 to vector<128x128xf32>
    %105 = arith.select %103, %70, %104 : vector<128x128xi1>, vector<128x128xf32>
    %cst_27 = arith.constant dense<0.000000e+00> : vector<128xf32>
    %106 = vector.multi_reduction <add>, %105, %cst_27 [1] : vector<128x128xf32> to vector<128xf32>
    %107 = vector.shape_cast %106 : vector<128xf32> to vector<128x1xf32>
    %108 = vector.shape_cast %107 : vector<128x1xf32> to vector<128x1xf32>
    %109 = vector.broadcast %108 : vector<128x1xf32> to vector<128x128xf32>
    %110 = arith.select %102, %109, %97 : vector<128x128xi1>, vector<128x128xf32>
    %c96_i32_28 = arith.constant 96 : i32
    %111 = vector.broadcast %c96_i32_28 : i32 to vector<128x128xi32>
    %112 = arith.cmpi sge, %6, %111 : vector<128x128xi32>
    %c128_i32 = arith.constant 128 : i32
    %113 = vector.broadcast %c128_i32 : i32 to vector<128x128xi32>
    %114 = arith.cmpi slt, %6, %113 : vector<128x128xi32>
    %115 = arith.andi %112, %114 : vector<128x128xi1>
    %116 = arith.andi %115, %50 : vector<128x128xi1>
    %cst_29 = arith.constant 0.000000e+00 : f32
    %117 = vector.broadcast %cst_29 : f32 to vector<128x128xf32>
    %118 = arith.select %116, %70, %117 : vector<128x128xi1>, vector<128x128xf32>
    %cst_30 = arith.constant dense<0.000000e+00> : vector<128xf32>
    %119 = vector.multi_reduction <add>, %118, %cst_30 [1] : vector<128x128xf32> to vector<128xf32>
    %120 = vector.shape_cast %119 : vector<128xf32> to vector<128x1xf32>
    %121 = vector.shape_cast %120 : vector<128x1xf32> to vector<128x1xf32>
    %122 = vector.broadcast %121 : vector<128x1xf32> to vector<128x128xf32>
    %123 = arith.select %115, %122, %110 : vector<128x128xi1>, vector<128x128xf32>
    %124 = tpu.reciprocal %123 {approx = true} : vector<128x128xf32> -> vector<128x128xf32>
    %125 = arith.mulf %70, %124 : vector<128x128xf32>
    %cst_31 = arith.constant 1.000000e+00 : f32
    %126 = vector.broadcast %cst_31 : f32 to vector<128x128xf32>
    %127 = arith.addf %126, %70 : vector<128x128xf32>
    %128 = tpu.reciprocal %127 {approx = true} : vector<128x128xf32> -> vector<128x128xf32>
    %129 = arith.select %56, %128, %5 : vector<128x128xi1>, vector<128x128xf32>
    %130 = arith.select %50, %125, %129 : vector<128x128xi1>, vector<128x128xf32>
    %c0_32 = arith.constant 0 : index
    %c0_33 = arith.constant 0 : index
    %131 = vector.load %arg4[%c0_32, %c0_33] : memref<128x128xf32, #tpu.memory_space<vmem>>, vector<128x128xf32>
    tpu.vector_store %arg4[%c0_32, %c0_33], %130 {strides = array<i32>} : memref<128x128xf32, #tpu.memory_space<vmem>>, vector<128x128xf32>,
    return
  }
  func.func @transform_0(%arg0: i32) -> (i32, i32) {
    %c0_i32 = arith.constant 0 : i32
    %c0_i32_0 = arith.constant 0 : i32
    return %arg0, %c0_i32 : i32, i32
  }
  func.func @transform_1(%arg0: i32) -> (i32, i32) {
    %c0_i32 = arith.constant 0 : i32
    %c0_i32_0 = arith.constant 0 : i32
    %c0_i32_1 = arith.constant 0 : i32
    return %c0_i32, %c0_i32_0 : i32, i32
  }
  func.func @transform_2(%arg0: i32) -> (i32, i32) {
    %c0_i32 = arith.constant 0 : i32
    %c0_i32_0 = arith.constant 0 : i32
    %c0_i32_1 = arith.constant 0 : i32
    return %c0_i32, %c0_i32_0 : i32, i32
  }
  func.func @transform_3(%arg0: i32) -> (i32, i32) {
    %c0_i32 = arith.constant 0 : i32
    %c0_i32_0 = arith.constant 0 : i32
    return %arg0, %c0_i32 : i32, i32
  }
}

</mosaic_0001>

<bundles_post_ra>
// kernel: uv_outputs_forward.1
= control target key start
LH: loop header
LB: loop body
LE: loop exit
PB: predicated region body
PF: predicated region fallthrough
CT: control target
= control target key end

     0   :  { %vm315_vm0 = vcmask 261120   ;;  %s2407_s1 = inlined_call_operand.vmem [shape: bf16[288,128], index: 1, kind: input, shape index: {}]   ;;  %s2408_s0 = inlined_call_operand.vmem [shape: bf16[128,288], index: 0, kind: input, shape index: {}]   ;;  %s2409_s2 = inlined_call_operand.vmem [shape: f32[1,128], index: 2, kind: input, shape index: {}]   ;;  %s2410_s3 = inlined_call_operand.vmem [shape: f32[128,128], index: 3, kind: output, shape index: {}]  }
   0x1   :  { %v1270_v0 = vld [vmem:[%s2407_s1 + $0x38] sm:$0xff]  ;;  %v1280_v2 = vld [vmem:[%s2407_s1 + $0x88] sm:$0xff]  ;;  %v1269_v3 = vld [vmem:[%s2407_s1 + $0x30] sm:$0xff] }
   0x2   :  { %v1278_v1 = vld [vmem:[%s2407_s1 + $0x78] sm:$0xff]  ;;  %340 = vmatpush.bf16.msra.mxu0 %v1270_v0  ;;  %v1277_v4 = vld [vmem:[%s2407_s1 + $0x70] sm:$0xff]  ;;  %444 = vmatpush.bf16.msra.mxu2 %v1280_v2  ;;  %v1279_v5 = vld [vmem:[%s2407_s1 + $0x80] sm:$0xff] }
   0x3   :  { %389 = vmatpush.bf16.msra.mxu1 %v1278_v1  ;;  %v1073_v6 = vld [vmem:[%s2408_s0 + $0x8] sm:$0xf]  ;;  %v1241_v7 = vld [vmem:[%s2408_s0 + $0x10] sm:$0xf0]  ;;  %1281 = vmatpush.bf16.msra.mxu3 %v1270_v0  ;;  %v1267_v11 = vld [vmem:[%s2407_s1 + $0x20] sm:$0xff] }
   0x4   :  { %v1074_v8 = vor.u32 %v1241_v7, %v1073_v6  ;;  %v1268_v9 = vld [vmem:[%s2407_s1 + $0x28] sm:$0xff]  ;;  %v1275_v12 = vld [vmem:[%s2407_s1 + $0x60] sm:$0xff]  ;;  %v1266_v13 = vld [vmem:[%s2407_s1 + $0x18] sm:$0xff] }
   0x5   :  { %v1276_v10 = vld [vmem:[%s2407_s1 + $0x68] sm:$0xff]  ;;  %v1274_v14 = vld [vmem:[%s2407_s1 + $0x58] sm:$0xff]  ;;  %v1265_v15 = vld [vmem:[%s2407_s1 + $0x10] sm:$0xff] }
   0x6   :  { %341 = vmatpush.bf16.msra.mxu0 %v1269_v3  ;;  %445 = vmatpush.bf16.msra.mxu2 %v1279_v5  ;;  %v1273_v16 = vld [vmem:[%s2407_s1 + $0x50] sm:$0xff]  ;;  %v1085_v17 = vld [vmem:[%s2408_s0 + $0x20] sm:$0xf]  ;;  %v1244_v18 = vld [vmem:[%s2408_s0 + $0x28] sm:$0xf0] }
   0x7   :  { %390 = vmatpush.bf16.msra.mxu1 %v1277_v4  ;;  %1282 = vmatpush.bf16.msra.mxu3 %v1269_v3  ;;  %v1086_v19 = vor.u32 %v1244_v18, %v1085_v17  ;;  %v1264_v20 = vld [vmem:[%s2407_s1 + $0x8] sm:$0xff]  ;;  %v1263_v22 = vld [vmem:[%s2407_s1] sm:$0xff]  ;;  %v1067_v27 = vld [vmem:[%s2408_s0 + $0xc] sm:$0xf0] }
   0x8   :  { %v1272_v21 = vld [vmem:[%s2407_s1 + $0x48] sm:$0xff]  ;;  %v1065_v23 = vld [vmem:[%s2408_s0] sm:$0xf]  ;;  %v1239_v26 = vld [vmem:[%s2408_s0 + $0x4] sm:$0xf] }
   0x9   :  { %1231 = vmatmul.msk.bf16.vlgmr.msra.gmra.mxu2 %vm315_vm0, %v1074_v8  ;;  %v1240_v24 = vld [vmem:[%s2408_s0 + $0x8] sm:$0xf0]  ;;  %v1271_v25 = vld [vmem:[%s2407_s1 + $0x40] sm:$0xff]  ;;  %v1070_v29 = vor.u32 %v1239_v26, %v1067_v27  ;;  %v1137_v30 = vld [vmem:[%s2408_s0 + $0x90] sm:$0xf]  ;;  %v487_v26 = vlaneseq }
   0xa   :  { %342 = vmatpush.bf16.msra.mxu0 %v1268_v9  ;;  %v1066_v28 = vor.u32 %v1240_v24, %v1065_v23  ;;  %v1258_v31 = vld [vmem:[%s2408_s0 + $0x98] sm:$0xf0]  ;;  %v1097_v33 = vld [vmem:[%s2408_s0 + $0x38] sm:$0xf]  ;;  %v1247_v34 = vld [vmem:[%s2408_s0 + $0x40] sm:$0xf0] }
   0xb   :  { %391 = vmatpush.bf16.msra.mxu1 %v1276_v10  ;;  %1283 = vmatpush.bf16.msra.mxu3 %v1268_v9  ;;  %v1138_v32 = vor.u32 %v1258_v31, %v1137_v30  ;;  %v1098_v35 = vor.u32 %v1247_v34, %v1097_v33  ;;  %v1077_v36 = vld [vmem:[%s2408_s0 + $0x18] sm:$0xf]  ;;  %v1243_v37 = vld [vmem:[%s2408_s0 + $0x20] sm:$0xf0]  ;;  %v1242_v38 = vld [vmem:[%s2408_s0 + $0x1c] sm:$0xf] }
   0xc   :  { %v1079_v39 = vld [vmem:[%s2408_s0 + $0x24] sm:$0xf0]  ;;  %v1078_v40 = vor.u32 %v1243_v37, %v1077_v36  ;;  %v1261_v43 = vld [vmem:[%s2408_s0 + $0xb0] sm:$0xf0]  ;;  %v1109_v45 = vld [vmem:[%s2408_s0 + $0x50] sm:$0xf] }
   0xd   :  { %v1082_v41 = vor.u32 %v1242_v38, %v1079_v39  ;;  %v1149_v42 = vld [vmem:[%s2408_s0 + $0xa8] sm:$0xf]  ;;  %v1250_v46 = vld [vmem:[%s2408_s0 + $0x58] sm:$0xf0]  ;;  %v1089_v48 = vld [vmem:[%s2408_s0 + $0x30] sm:$0xf] }
   0xe   :  { %343 = vmatpush.bf16.msra.mxu0 %v1267_v11  ;;  %v1150_v44 = vor.u32 %v1261_v43, %v1149_v42  ;;  %v1110_v47 = vor.u32 %v1250_v46, %v1109_v45  ;;  %v1246_v49 = vld [vmem:[%s2408_s0 + $0x38] sm:$0xf0]  ;;  %v1245_v50 = vld [vmem:[%s2408_s0 + $0x34] sm:$0xf]  ;;  %v1091_v51 = vld [vmem:[%s2408_s0 + $0x3c] sm:$0xf0] }
   0xf   :  { %392 = vmatpush.bf16.msra.mxu1 %v1275_v12  ;;  %1284 = vmatpush.bf16.msra.mxu3 %v1267_v11  ;;  %v1090_v52 = vor.u32 %v1246_v49, %v1089_v48  ;;  %v1094_v53 = vor.u32 %v1245_v50, %v1091_v51  ;;  %v1257_v54 = vld [vmem:[%s2408_s0 + $0x94] sm:$0xf]  ;;  %v1139_v55 = vld [vmem:[%s2408_s0 + $0x9c] sm:$0xf0]  ;;  %v1121_v57 = vld [vmem:[%s2408_s0 + $0x68] sm:$0xf] }
  0x10   :  { %v1142_v56 = vor.u32 %v1257_v54, %v1139_v55  ;;  %v1253_v58 = vld [vmem:[%s2408_s0 + $0x70] sm:$0xf0]  ;;  %v1101_v60 = vld [vmem:[%s2408_s0 + $0x48] sm:$0xf]  ;;  %v1248_v62 = vld [vmem:[%s2408_s0 + $0x4c] sm:$0xf] }
  0x11   :  { %v1122_v59 = vor.u32 %v1253_v58, %v1121_v57  ;;  %v1249_v61 = vld [vmem:[%s2408_s0 + $0x50] sm:$0xf0]  ;;  %v1103_v63 = vld [vmem:[%s2408_s0 + $0x54] sm:$0xf0]  ;;  %v1260_v2 = vld [vmem:[%s2408_s0 + $0xac] sm:$0xf] }
  0x12   :  { %344 = vmatpush.bf16.msra.mxu0 %v1266_v13  ;;  %v1102_v0 = vor.u32 %v1249_v61, %v1101_v60  ;;  %v1151_v3 = vld [vmem:[%s2408_s0 + $0xb4] sm:$0xf0]  ;;  %v1133_v5 = vld [vmem:[%s2408_s0 + $0x80] sm:$0xf]  ;;  %v1256_v6 = vld [vmem:[%s2408_s0 + $0x88] sm:$0xf0] }
  0x13   :  { %393 = vmatpush.bf16.msra.mxu1 %v1274_v14  ;;  %1285 = vmatpush.bf16.msra.mxu3 %v1266_v13  ;;  %v1134_v7 = vor.u32 %v1256_v6, %v1133_v5  ;;  %v1113_v8 = vld [vmem:[%s2408_s0 + $0x60] sm:$0xf]  ;;  %v1252_v9 = vld [vmem:[%s2408_s0 + $0x68] sm:$0xf0]  ;;  %v1115_v11 = vld [vmem:[%s2408_s0 + $0x6c] sm:$0xf0] }
  0x14   :  { %v1125_v17 = vld [vmem:[%s2408_s0 + $0x78] sm:$0xf]  ;;  %v1255_v18 = vld [vmem:[%s2408_s0 + $0x80] sm:$0xf0]  ;;  %v1157_v23 = vld [vmem:[%s2408_s0 + $0xb0] sm:$0xf] }
  0x15   :  { %v1262_v24 = vld [vmem:[%s2408_s0 + $0xb8] sm:$0xf0]  ;;  %v1632_v30 = vld [vmem:[%s2409_s2] ss:$0 sm:$0xff] }
  0x16   :  { %345 = vmatpush.bf16.msra.mxu0 %v1265_v15 }
  0x17   :  { %394 = vmatpush.bf16.msra.mxu1 %v1273_v16  ;;  %1286 = vmatpush.bf16.msra.mxu3 %v1265_v15  ;;  %v1259_v15 = vld [vmem:[%s2408_s0 + $0xa0] sm:$0xf0] }
  0x19   :  { %1232 = vmatmul.msk.bf16.gmra.mxu2 %vm315_vm0, %v1086_v19  ;;  %v1254_v19 = vld [vmem:[%s2408_s0 + $0x7c] sm:$0xf] }
  0x1a   :  { %346 = vmatpush.bf16.msra.mxu0 %v1264_v20 }
  0x1b   :  { %395 = vmatpush.bf16.msra.mxu1 %v1272_v21  ;;  %1287 = vmatpush.bf16.msra.mxu3 %v1264_v20  ;;  %v1127_v20 = vld [vmem:[%s2408_s0 + $0x84] sm:$0xf0] }
  0x1e   :  { %347 = vmatpush.bf16.msra.mxu0 %v1263_v22 }
  0x1f   :  { %396 = vmatpush.bf16.msra.mxu1 %v1271_v25  ;;  %1288 = vmatpush.bf16.msra.mxu3 %v1263_v22  ;;  %v1130_v22 = vor.u32 %v1254_v19, %v1127_v20 }
  0x21   :  { %348 = vmatmul.bf16.vlgmr.msra.gmra.mxu0 %v1066_v28  ;;  %v1620_v28 = vand.u32 127, %v487_v26 }
  0x22   :  { %397 = vmatmul.bf16.vlgmr.msra.gmra.mxu1 %v1070_v29  ;;  %378 = vmatmul.bf16.vlgmr.msra.gmra.mxu3 %v1138_v32 }
  0x23   :  { %1289 = vmatpush.bf16.msrb.mxu3 %v1278_v1  ;;  %v1106_v1 = vor.u32 %v1248_v62, %v1103_v63  ;;  %vm2412_vm1 = vcmp.ge.s32.totalorder %v1620_v28, 32  ;;  %vm496_vm2 = vcmp.lt.s32.totalorder %v1620_v28, 40  ;;  %vm490_vm3 = vcmp.lt.s32.totalorder %v1620_v28, 8 }
  0x24   :  { %vm497_vm4 = vmand %vm2412_vm1, %vm496_vm2  ;;  %vm2413_vm5 = vcmp.ge.s32.totalorder %v1620_v28, 64  ;;  %vm504_vm6 = vcmp.lt.s32.totalorder %v1620_v28, 72  ;;  %vm2411_vm9 = vcmp.ge.s32.totalorder %v1620_v28, 96  ;;  %vm512_vm10 = vcmp.lt.s32.totalorder %v1620_v28, 104 }
  0x25   :  { %vm498_vm7 = vmor %vm490_vm3, %vm497_vm4  ;;  %vm492_vm14 = vcmp.ge.s32.totalorder %v1620_v28, 8  ;;  %vm493_vm15 = vcmp.lt.s32.totalorder %v1620_v28, 16  ;;  %vm500_vm2 = vcmp.lt.s32.totalorder %v1620_v28, 48 }
  0x26   :  { %vm505_vm8 = vmand %vm2413_vm5, %vm504_vm6  ;;  %vm507_vm6 = vcmp.ge.s32.totalorder %v1620_v28, 72 }
  0x27   :  { %1290 = vmatpush.bf16.msrb.mxu3 %v1277_v4  ;;  %v1154_v4 = vor.u32 %v1260_v2, %v1151_v3  ;;  %vm506_vm11 = vmor %vm498_vm7, %vm505_vm8  ;;  %vm508_vm7 = vcmp.lt.s32.totalorder %v1620_v28, 80 }
  0x28   :  { %vm513_vm12 = vmand %vm2411_vm9, %vm512_vm10 }
  0x29   :  { %1233 = vmatmul.msk.bf16.gmra.mxu2 %vm315_vm0, %v1098_v35  ;;  %vm1641_vm13 = vmor %vm506_vm11, %vm513_vm12  ;;  %vm515_vm11 = vcmp.ge.s32.totalorder %v1620_v28, 104  ;;  %vm516_vm12 = vcmp.lt.s32.totalorder %v1620_v28, 112 }
  0x2a   :  { %vm494_vm3 = vmand %vm492_vm14, %vm493_vm15  ;;  %vm813_vm14 = vcmp.lt.s32.totalorder %v1620_v28, 96  ;;  %vm746_vm15 = vcmp.lt.s32.totalorder %v1620_v28, 64 }
  0x2b   :  { %1291 = vmatpush.bf16.msrb.mxu3 %v1276_v10  ;;  %v1251_v10 = vld [vmem:[%s2408_s0 + $0x64] sm:$0xf]  ;;  %vm509_vm10 = vmand %vm507_vm6, %vm508_vm7 }
  0x2c   :  { %v1118_v13 = vor.u32 %v1251_v10, %v1115_v11  ;;  %vm517_vm1 = vmand %vm515_vm11, %vm516_vm12 }
  0x2f   :  { %1292 = vmatpush.bf16.msrb.mxu3 %v1275_v12  ;;  %v1114_v12 = vor.u32 %v1252_v9, %v1113_v8 }
  0x31   :  { %353 = vmatmul.bf16.gmra.mxu0 %v1078_v40 }
  0x32   :  { %402 = vmatmul.bf16.gmra.mxu1 %v1082_v41  ;;  %383 = vmatmul.bf16.gmra.mxu3 %v1150_v44 }
  0x33   :  { %1293 = vmatpush.bf16.msrb.mxu3 %v1274_v14  ;;  %v1145_v14 = vld [vmem:[%s2408_s0 + $0x98] sm:$0xf] }
  0x37   :  { %1294 = vmatpush.bf16.msrb.mxu3 %v1273_v16  ;;  %v1146_v16 = vor.u32 %v1259_v15, %v1145_v14 }
  0x39   :  { %1234 = vmatmul.msk.bf16.gmra.mxu2 %vm315_vm0, %v1110_v47 }
  0x3b   :  { %1295 = vmatpush.bf16.msrb.mxu3 %v1272_v21  ;;  %v1126_v21 = vor.u32 %v1255_v18, %v1125_v17 }
  0x3f   :  { %1296 = vmatpush.bf16.msrb.mxu3 %v1271_v25  ;;  %v1158_v25 = vor.u32 %v1262_v24, %v1157_v23 }
  0x41   :  { %358 = vmatmul.bf16.gmra.mxu0 %v1090_v52 }
  0x42   :  { %407 = vmatmul.bf16.gmra.mxu1 %v1094_v53  ;;  %427 = vmatmul.bf16.vlgmr.msrb.gmra.mxu3 %v1142_v56 }
  0x49   :  { %1235 = vmatmul.msk.bf16.gmra.mxu2 %vm315_vm0, %v1122_v59 }
  0x51   :  { %363 = vmatmul.bf16.gmra.mxu0 %v1102_v0 }
  0x52   :  { %412 = vmatmul.bf16.gmra.mxu1 %v1106_v1  ;;  %432 = vmatmul.bf16.gmra.mxu3 %v1154_v4 }
  0x59   :  { %1236 = vmatmul.msk.bf16.gmra.mxu2 %vm315_vm0, %v1134_v7 }
  0x61   :  { %368 = vmatmul.bf16.gmra.mxu0 %v1114_v12 }
  0x62   :  { %417 = vmatmul.bf16.gmra.mxu1 %v1118_v13 }
  0x69   :  { %1237 = vmatmul.msk.bf16.gmra.mxu2 %vm315_vm0, %v1146_v16 }
  0x71   :  { %373 = vmatmul.bf16.gmra.mxu0 %v1126_v21 }
  0x72   :  { %422 = vmatmul.bf16.gmra.mxu1 %v1130_v22 }
  0x79   :  { %1238 = vmatmul.msk.bf16.gmra.mxu2 %vm315_vm0, %v1158_v25  ;;  %vm499_vm0 = vcmp.ge.s32.totalorder %v1620_v28, 40 }
  0x7a   :  { %vm501_vm4 = vmand %vm499_vm0, %vm500_vm2  ;;  %vm2421_vm0 = vcmp.ge.s32.totalorder %v1620_v28, 32 }
  0x7b   :  { %vm502_vm8 = vmor %vm494_vm3, %vm501_vm4  ;;  %vm679_vm3 = vcmp.lt.s32.totalorder %v1620_v28, 32 }
  0x7c   :  { %vm510_vm9 = vmor %vm502_vm8, %vm509_vm10  ;;  %vm2430_vm8 = vcmp.ge.s32.totalorder %v1620_v28, 96 }
  0x7d   :  { %vm1749_vm5 = vmor %vm510_vm9, %vm517_vm1  ;;  %vm2418_vm1 = vcmp.ge.s32.totalorder %v1620_v28, 64 }
  0x7e   :  { %vm1763_vm9 = vmand %vm2418_vm1, %vm813_vm14 }
  0x7f   :  { %vm1769_vm2 = vmand %vm2421_vm0, %vm746_vm15 }
  0x80   :  { %vm1781_vm4 = vmand %vm1763_vm9, %vm1641_vm13 }
  0x81   :  { %vm1791_vm6 = vmand %vm1769_vm2, %vm1641_vm13 }
  0x82   :  { %vm1799_vm7 = vmand %vm679_vm3, %vm1641_vm13 }
  0x83   :  { %vm1824_vm10 = vmand %vm2430_vm8, %vm1641_vm13 }
  0x84   :  { %vm2433_vm11 = vmmov %vm2430_vm8 }
  0x85   :  { %vm2434_vm12 = vmmov %vm2430_vm8 }
  0x86   :  { %vm2435_vm14 = vmmov %vm2430_vm8 }
  0x87   :  { %vm2436_vm15 = vmmov %vm2430_vm8 }
  0x88   :  { %vm2437_vm1 = vmmov %vm2430_vm8 }
  0x89   :  { %vm2438_vm0 = vmmov %vm2437_vm1 }
  0x8a   :  { %vm2442_vm8 = vmmov %vm2438_vm0 }
  0x8c   :  { %v447_v27 = vpop.f32.mrf.mxu2 }
  0x94   :  { %v449_v29 = vpop.f32.mrf.mxu2 }
  0x9c   :  { %v452_v31 = vpop.f32.mrf.mxu2 }
  0x9e   :  { %v349_v32 = vpop.f32.mrf.mxu0 }
  0x9f   :  { %v350_v33 = vadd.f32 %v1632_v30, %v349_v32  ;;  %v398_v34 = vpop.f32.mrf.mxu1 }
  0xa1   :  { %v399_v35 = vadd.f32 %v398_v34, %v350_v33 }
  0xa3   :  { %v1645_v37 = vadd.f32 %v447_v27, %v399_v35 }
  0xa4   :  { %v454_v38 = vpop.f32.mrf.mxu2 }
  0xa5   :  { %v519_v39 = vsel %vm1641_vm13, %v1645_v37, -1e+30  ;;  %v379_v59 = vpop.f32.mrf.mxu3 }
  0xa6   :  { %v351_v40 = vpop.f32.mrf.mxu0  ;;  %535 = vmax.xlane.f32.xlu0 %v519_v39 }
  0xa7   :  { %v352_v41 = vadd.f32 %v1632_v30, %v351_v40  ;;  %v400_v42 = vpop.f32.mrf.mxu1 }
  0xa9   :  { %v401_v43 = vadd.f32 %v400_v42, %v352_v41 }
  0xab   :  { %v1651_v44 = vadd.f32 %v449_v29, %v401_v43 }
  0xac   :  { %v457_v45 = vpop.f32.mrf.mxu2 }
  0xad   :  { %v520_v46 = vsel %vm1641_vm13, %v1651_v44, -1e+30  ;;  %v381_v5 = vpop.f32.mrf.mxu3 }
  0xae   :  { %v354_v47 = vpop.f32.mrf.mxu0  ;;  %537 = vmax.xlane.f32.xlu0 %v520_v46 }
  0xaf   :  { %v355_v48 = vadd.f32 %v1632_v30, %v354_v47  ;;  %v403_v49 = vpop.f32.mrf.mxu1 }
  0xb1   :  { %v404_v50 = vadd.f32 %v403_v49, %v355_v48 }
  0xb3   :  { %v1657_v51 = vadd.f32 %v452_v31, %v404_v50 }
  0xb4   :  { %v459_v52 = vpop.f32.mrf.mxu2 }
  0xb5   :  { %v521_v53 = vsel %vm1641_vm13, %v1657_v51, -1e+30  ;;  %v384_v16 = vpop.f32.mrf.mxu3 }
  0xb6   :  { %v356_v54 = vpop.f32.mrf.mxu0  ;;  %539 = vmax.xlane.f32.xlu1 %v521_v53 }
  0xb7   :  { %v357_v55 = vadd.f32 %v1632_v30, %v356_v54  ;;  %v405_v56 = vpop.f32.mrf.mxu1 }
  0xb9   :  { %v406_v57 = vadd.f32 %v405_v56, %v357_v55 }
  0xbb   :  { %v1663_v58 = vadd.f32 %v454_v38, %v406_v57 }
  0xbc   :  { %v462_v60 = vpop.f32.mrf.mxu2 }
  0xbd   :  { %v522_v61 = vsel %vm1641_vm13, %v1663_v58, -1e+30  ;;  %v386_v25 = vpop.f32.mrf.mxu3 }
  0xbe   :  { %v359_v62 = vpop.f32.mrf.mxu0  ;;  %541 = vmax.xlane.f32.xlu1 %v522_v61 }
  0xbf   :  { %v360_v63 = vadd.f32 %v1632_v30, %v359_v62  ;;  %v408_v0 = vpop.f32.mrf.mxu1 }
  0xc1   :  { %v409_v1 = vadd.f32 %v408_v0, %v360_v63 }
  0xc3   :  { %v1669_v2 = vadd.f32 %v457_v45, %v409_v1  ;;  %v380_v45 = vadd.f32 %v1632_v30, %v379_v59  ;;  %v382_v59 = vadd.f32 %v1632_v30, %v381_v5  ;;  %v385_v5 = vadd.f32 %v1632_v30, %v384_v16 }
  0xc4   :  { %v464_v3 = vpop.f32.mrf.mxu2 }
  0xc5   :  { %v523_v4 = vsel %vm1641_vm13, %v1669_v2, -1e+30  ;;  %v428_v38 = vpop.f32.mrf.mxu3 }
  0xc6   :  { %v361_v6 = vpop.f32.mrf.mxu0  ;;  %543 = vmax.xlane.f32.xlu2 %v523_v4  ;;  %v429_v48 = vadd.f32 %v428_v38, %v380_v45 }
  0xc7   :  { %v362_v7 = vadd.f32 %v1632_v30, %v361_v6  ;;  %v410_v8 = vpop.f32.mrf.mxu1 }
  0xc9   :  { %v411_v9 = vadd.f32 %v410_v8, %v362_v7 }
  0xcb   :  { %v1675_v10 = vadd.f32 %v459_v52, %v411_v9 }
  0xcc   :  { %v467_v11 = vpop.f32.mrf.mxu2 }
  0xcd   :  { %v524_v12 = vsel %vm1641_vm13, %v1675_v10, -1e+30  ;;  %v430_v50 = vpop.f32.mrf.mxu3 }
  0xce   :  { %v364_v13 = vpop.f32.mrf.mxu0  ;;  %545 = vmax.xlane.f32.xlu2 %v524_v12  ;;  %v431_v1 = vadd.f32 %v430_v50, %v382_v59 }
  0xcf   :  { %v365_v14 = vadd.f32 %v1632_v30, %v364_v13  ;;  %v413_v15 = vpop.f32.mrf.mxu1 }
  0xd1   :  { %v414_v17 = vadd.f32 %v413_v15, %v365_v14  ;;  %v387_v15 = vadd.f32 %v1632_v30, %v386_v25 }
  0xd3   :  { %v1681_v18 = vadd.f32 %v462_v60, %v414_v17 }
  0xd4   :  { %v469_v19 = vpop.f32.mrf.mxu2 }
  0xd5   :  { %v525_v20 = vsel %vm1641_vm13, %v1681_v18, -1e+30 }
  0xd6   :  { %v366_v21 = vpop.f32.mrf.mxu0  ;;  %547 = vmax.xlane.f32.xlu0 %v525_v20 }
  0xd7   :  { %v367_v22 = vadd.f32 %v1632_v30, %v366_v21  ;;  %v415_v23 = vpop.f32.mrf.mxu1 }
  0xd9   :  { %v416_v24 = vadd.f32 %v415_v23, %v367_v22 }
  0xdb   :  { %v1687_v26 = vadd.f32 %v464_v3, %v416_v24  ;;  %v433_v3 = vpop.f32.mrf.mxu3 }
  0xdc   :  { %v472_v27 = vpop.f32.mrf.mxu2 }
  0xdd   :  { %v526_v29 = vsel %vm1641_vm13, %v1687_v26, -1e+30 }
  0xde   :  { %v369_v31 = vpop.f32.mrf.mxu0  ;;  %549 = vmax.xlane.f32.xlu1 %v526_v29 }
  0xdf   :  { %v370_v32 = vadd.f32 %v1632_v30, %v369_v31  ;;  %v418_v33 = vpop.f32.mrf.mxu1 }
  0xe1   :  { %v419_v34 = vadd.f32 %v418_v33, %v370_v32 }
  0xe3   :  { %v1693_v35 = vadd.f32 %v467_v11, %v419_v34  ;;  %v434_v11 = vadd.f32 %v433_v3, %v385_v5  ;;  %v435_v17 = vpop.f32.mrf.mxu3  ;;  %v584_v34 = vsub.f32 0.0, %v1651_v44 }
  0xe4   :  { %v474_v39 = vpop.f32.mrf.mxu2 }
  0xe5   :  { %v527_v40 = vsel %vm1641_vm13, %v1693_v35, -1e+30 }
  0xe6   :  { %v371_v41 = vpop.f32.mrf.mxu0  ;;  %551 = vmax.xlane.f32.xlu2 %v527_v40 }
  0xe7   :  { %v372_v42 = vadd.f32 %v1632_v30, %v371_v41  ;;  %v420_v43 = vpop.f32.mrf.mxu1 }
  0xe9   :  { %v421_v46 = vadd.f32 %v420_v43, %v372_v42  ;;  %v600_v42 = vsel %vm1749_vm5, %v584_v34, 0.0  ;;  %v588_v34 = vsub.f32 0.0, %v1675_v10 }
  0xeb   :  { %v1700_v47 = vadd.f32 %v469_v19, %v421_v46  ;;  %v436_v19 = vadd.f32 %v435_v17, %v387_v15 }
  0xec   :  { %v477_v49 = vpop.f32.mrf.mxu2 }
  0xed   :  { %v528_v52 = vsel %vm1641_vm13, %v1700_v47, -1e+30  ;;  %v1706_v56 = vadd.f32 %v477_v49, %v429_v48 }
  0xee   :  { %v374_v53 = vpop.f32.mrf.mxu0  ;;  %553 = vmax.xlane.f32.xlu0 %v528_v52 }
  0xef   :  { %v375_v54 = vadd.f32 %v1632_v30, %v374_v53  ;;  %v423_v55 = vpop.f32.mrf.mxu1  ;;  %v531_v63 = vsel %vm1641_vm13, %v1706_v56, -1e+30  ;;  %v585_v53 = vsub.f32 0.0, %v1657_v51 }
  0xf1   :  { %v424_v57 = vadd.f32 %v423_v55, %v375_v54 }
  0xf3   :  { %v1709_v60 = vadd.f32 %v472_v27, %v424_v57 }
  0xf4   :  { %v479_v61 = vpop.f32.mrf.mxu2 }
  0xf5   :  { %v529_v62 = vsel %vm1641_vm13, %v1709_v60, -1e+30  ;;  %v1719_v7 = vadd.f32 %v479_v61, %v431_v1 }
  0xf6   :  { %v376_v0 = vpop.f32.mrf.mxu0  ;;  %555 = vmax.xlane.f32.xlu1 %v529_v62  ;;  %559 = vmax.xlane.f32.xlu0 %v531_v63  ;;  %v601_v62 = vsel %vm1749_vm5, %v585_v53, 0.0  ;;  %v604_v53 = vsel %vm1749_vm5, %v588_v34, 0.0 }
  0xf7   :  { %v377_v4 = vadd.f32 %v1632_v30, %v376_v0  ;;  %v425_v6 = vpop.f32.mrf.mxu1  ;;  %v532_v14 = vsel %vm1641_vm13, %v1719_v7, -1e+30  ;;  %v583_v30 = vsub.f32 0.0, %v1645_v37 }
  0xf9   :  { %v426_v8 = vadd.f32 %v425_v6, %v377_v4  ;;  %v599_v29 = vsel %vm1749_vm5, %v583_v30, 0.0  ;;  %v586_v6 = vsub.f32 0.0, %v1663_v58 }
  0xfb   :  { %v1721_v9 = vadd.f32 %v474_v39, %v426_v8 }
  0xfc   :  { %v482_v12 = vpop.f32.mrf.mxu2 }
  0xfd   :  { %v530_v13 = vsel %vm1641_vm13, %v1721_v9, -1e+30  ;;  %v1730_v16 = vadd.f32 %v482_v12, %v434_v11 }
  0xfe   :  { %557 = vmax.xlane.f32.xlu2 %v530_v13  ;;  %561 = vmax.xlane.f32.xlu1 %v532_v14  ;;  %v602_v14 = vsel %vm1749_vm5, %v586_v6, 0.0  ;;  %v589_v6 = vsub.f32 0.0, %v1681_v18 }
  0xff   :  { %v533_v21 = vsel %vm1641_vm13, %v1730_v16, -1e+30 }
 0x104   :  { %v484_v20 = vpop.f32.mrf.mxu2 }
 0x105   :  { %v1735_v22 = vadd.f32 %v484_v20, %v436_v19  ;;  %v587_v20 = vsub.f32 0.0, %v1669_v2 }
 0x106   :  { %563 = vmax.xlane.f32.xlu2 %v533_v21 }
 0x107   :  { %v534_v23 = vsel %vm1641_vm13, %v1735_v22, -1e+30 }
 0x108   :  { %565 = vmax.xlane.f32.xlu0 %v534_v23 }
 0x119   :  { %v536_v25 = vpop.xlane.xlu0 %535 }
 0x11a   :  { %v567_v27 = vsub.f32 %v1645_v37, %v536_v25 }
 0x11c   :  { %v615_v31 = vsel %vm1641_vm13, %v567_v27, %v599_v29 }
 0x11d   :  { %v631_v32 = vmin.f32 %v615_v31, 80.0  ;;  %v603_v31 = vsel %vm1749_vm5, %v587_v20, 0.0 }
 0x11f   :  { %v647_v33 = vmul.f32 1.442695, %v631_v32 }
 0x121   :  { %1298 = vpow2.f32 %v647_v33  ;;  %v538_v39 = vpop.xlane.xlu0 %537 }
 0x122   :  { %v568_v41 = vsub.f32 %v1651_v44, %v538_v39 }
 0x124   :  { %v616_v45 = vsel %vm1641_vm13, %v568_v41, %v600_v42 }
 0x125   :  { %v632_v48 = vmin.f32 %v616_v45, 80.0 }
 0x127   :  { %v1803_v50 = vpop.eup %1298  ;;  %v649_v52 = vmul.f32 1.442695, %v632_v48 }
 0x128   :  { %v816_v54 = vsel %vm1781_vm4, %v1803_v50, 0.0  ;;  %v749_v55 = vsel %vm1791_vm6, %v1803_v50, 0.0  ;;  %v682_v57 = vsel %vm1799_vm7, %v1803_v50, 0.0  ;;  %v883_v12 = vsel %vm1824_vm10, %v1803_v50, 0.0 }
 0x129   :  { %1300 = vpow2.f32 %v649_v52  ;;  %v540_v59 = vpop.xlane.xlu1 %539  ;;  %832 = vadd.xlane.f32.xlu0 %v816_v54  ;;  %765 = vadd.xlane.f32.xlu2 %v749_v55 }
 0x12a   :  { %v569_v61 = vsub.f32 %v1657_v51, %v540_v59  ;;  %698 = vadd.xlane.f32.xlu1 %v682_v57 }
 0x12c   :  { %v617_v63 = vsel %vm1641_vm13, %v569_v61, %v601_v62 }
 0x12d   :  { %v633_v0 = vmin.f32 %v617_v63, 80.0 }
 0x12f   :  { %v1828_v3 = vpop.eup %1300  ;;  %v651_v4 = vmul.f32 1.442695, %v633_v0 }
 0x130   :  { %v750_v5 = vsel %vm1791_vm6, %v1828_v3, 0.0  ;;  %v683_v8 = vsel %vm1799_vm7, %v1828_v3, 0.0  ;;  %v884_v23 = vsel %vm1824_vm10, %v1828_v3, 0.0  ;;  %v817_v25 = vsel %vm1781_vm4, %v1828_v3, 0.0 }
 0x131   :  { %1302 = vpow2.f32 %v651_v4  ;;  %v542_v11 = vpop.xlane.xlu1 %541  ;;  %767 = vadd.xlane.f32.xlu0 %v750_v5  ;;  %700 = vadd.xlane.f32.xlu2 %v683_v8 }
 0x132   :  { %v570_v13 = vsub.f32 %v1663_v58, %v542_v11  ;;  %899 = vadd.xlane.f32.xlu1 %v883_v12 }
 0x134   :  { %v618_v15 = vsel %vm1641_vm13, %v570_v13, %v602_v14  ;;  %v605_v13 = vsel %vm1749_vm5, %v589_v6, 0.0 }
 0x135   :  { %v634_v19 = vmin.f32 %v618_v15, 80.0 }
 0x137   :  { %v1845_v17 = vpop.eup %1302  ;;  %v653_v29 = vmul.f32 1.442695, %v634_v19 }
 0x138   :  { %v684_v21 = vsel %vm1799_vm7, %v1845_v17, 0.0  ;;  %v885_v39 = vsel %vm1824_vm10, %v1845_v17, 0.0  ;;  %v818_v41 = vsel %vm1781_vm4, %v1845_v17, 0.0  ;;  %v751_v45 = vsel %vm1791_vm6, %v1845_v17, 0.0 }
 0x139   :  { %v544_v30 = vpop.xlane.xlu2 %543  ;;  %702 = vadd.xlane.f32.xlu0 %v684_v21  ;;  %901 = vadd.xlane.f32.xlu2 %v884_v23  ;;  %1304 = vpow2.f32 %v653_v29  ;;  %v590_v21 = vsub.f32 0.0, %v1687_v26 }
 0x13a   :  { %v571_v27 = vsub.f32 %v1669_v2, %v544_v30  ;;  %834 = vadd.xlane.f32.xlu1 %v817_v25 }
 0x13c   :  { %v619_v32 = vsel %vm1641_vm13, %v571_v27, %v603_v31  ;;  %v606_v31 = vsel %vm1749_vm5, %v590_v21, 0.0 }
 0x13d   :  { %v635_v33 = vmin.f32 %v619_v32, 80.0 }
 0x13f   :  { %v655_v52 = vmul.f32 1.442695, %v635_v33  ;;  %v1877_v55 = vpop.eup %1304 }
 0x140   :  { %v819_v59 = vsel %vm1781_vm4, %v1877_v55, 0.0  ;;  %v752_v61 = vsel %vm1791_vm6, %v1877_v55, 0.0  ;;  %v685_v62 = vsel %vm1799_vm7, %v1877_v55, 0.0  ;;  %v886_v12 = vsel %vm1824_vm10, %v1877_v55, 0.0 }
 0x141   :  { %v546_v42 = vpop.xlane.xlu2 %545  ;;  %903 = vadd.xlane.f32.xlu0 %v885_v39  ;;  %836 = vadd.xlane.f32.xlu2 %v818_v41  ;;  %1306 = vpow2.f32 %v655_v52  ;;  %v591_v39 = vsub.f32 0.0, %v1693_v35 }
 0x142   :  { %v572_v48 = vsub.f32 %v1675_v10, %v546_v42  ;;  %769 = vadd.xlane.f32.xlu1 %v751_v45 }
 0x144   :  { %v620_v54 = vsel %vm1641_vm13, %v572_v48, %v604_v53  ;;  %v607_v53 = vsel %vm1749_vm5, %v591_v39, 0.0 }
 0x145   :  { %v636_v57 = vmin.f32 %v620_v54, 80.0 }
 0x147   :  { %v657_v63 = vmul.f32 1.442695, %v636_v57  ;;  %v1888_v0 = vpop.eup %1306 }
 0x148   :  { %v753_v8 = vsel %vm1791_vm6, %v1888_v0, 0.0  ;;  %v686_v11 = vsel %vm1799_vm7, %v1888_v0, 0.0  ;;  %v887_v25 = vsel %vm1824_vm10, %v1888_v0, 0.0  ;;  %v820_v27 = vsel %vm1781_vm4, %v1888_v0, 0.0 }
 0x149   :  { %838 = vadd.xlane.f32.xlu0 %v819_v59  ;;  %771 = vadd.xlane.f32.xlu2 %v752_v61  ;;  %v548_v4 = vpop.xlane.xlu0 %547  ;;  %1308 = vpow2.f32 %v657_v63 }
 0x14a   :  { %704 = vadd.xlane.f32.xlu1 %v685_v62  ;;  %v573_v5 = vsub.f32 %v1681_v18, %v548_v4 }
 0x14c   :  { %v621_v14 = vsel %vm1641_vm13, %v573_v5, %v605_v13 }
 0x14d   :  { %v637_v20 = vmin.f32 %v621_v14, 80.0 }
 0x14f   :  { %v1905_v15 = vpop.eup %1308  ;;  %v659_v29 = vmul.f32 1.442695, %v637_v20 }
 0x150   :  { %v687_v30 = vsel %vm1799_vm7, %v1905_v15, 0.0  ;;  %v888_v42 = vsel %vm1824_vm10, %v1905_v15, 0.0  ;;  %v821_v45 = vsel %vm1781_vm4, %v1905_v15, 0.0  ;;  %v754_v48 = vsel %vm1791_vm6, %v1905_v15, 0.0 }
 0x151   :  { %773 = vadd.xlane.f32.xlu0 %v753_v8  ;;  %706 = vadd.xlane.f32.xlu2 %v686_v11  ;;  %v550_v19 = vpop.xlane.xlu1 %549  ;;  %1310 = vpow2.f32 %v659_v29  ;;  %v592_v8 = vsub.f32 0.0, %v1700_v47 }
 0x152   :  { %905 = vadd.xlane.f32.xlu1 %v886_v12  ;;  %v574_v23 = vsub.f32 %v1687_v26, %v550_v19 }
 0x153   :  { %v608_v19 = vsel %vm1749_vm5, %v592_v8, 0.0 }
 0x154   :  { %v622_v32 = vsel %vm1641_vm13, %v574_v23, %v606_v31 }
 0x155   :  { %v638_v34 = vmin.f32 %v622_v32, 80.0 }
 0x157   :  { %v661_v52 = vmul.f32 1.442695, %v638_v34  ;;  %v1937_v57 = vpop.eup %1310 }
 0x158   :  { %v822_v61 = vsel %vm1781_vm4, %v1937_v57, 0.0  ;;  %v755_v62 = vsel %vm1791_vm6, %v1937_v57, 0.0  ;;  %v688_v63 = vsel %vm1799_vm7, %v1937_v57, 0.0  ;;  %v889_v14 = vsel %vm1824_vm10, %v1937_v57, 0.0 }
 0x159   :  { %708 = vadd.xlane.f32.xlu0 %v687_v30  ;;  %907 = vadd.xlane.f32.xlu2 %v887_v25  ;;  %v552_v33 = vpop.xlane.xlu2 %551  ;;  %1312 = vpow2.f32 %v661_v52  ;;  %v595_v30 = vsub.f32 0.0, %v1706_v56 }
 0x15a   :  { %840 = vadd.xlane.f32.xlu1 %v820_v27  ;;  %v575_v41 = vsub.f32 %v1693_v35, %v552_v33 }
 0x15b   :  { %v611_v39 = vsel %vm1749_vm5, %v595_v30, 0.0 }
 0x15c   :  { %v623_v54 = vsel %vm1641_vm13, %v575_v41, %v607_v53 }
 0x15d   :  { %v639_v59 = vmin.f32 %v623_v54, 80.0 }
 0x15f   :  { %v663_v4 = vmul.f32 1.442695, %v639_v59  ;;  %v1948_v5 = vpop.eup %1312 }
 0x160   :  { %v756_v12 = vsel %vm1791_vm6, %v1948_v5, 0.0  ;;  %v689_v13 = vsel %vm1799_vm7, %v1948_v5, 0.0  ;;  %v890_v31 = vsel %vm1824_vm10, %v1948_v5, 0.0  ;;  %v823_v32 = vsel %vm1781_vm4, %v1948_v5, 0.0 }
 0x161   :  { %909 = vadd.xlane.f32.xlu0 %v888_v42  ;;  %842 = vadd.xlane.f32.xlu2 %v821_v45  ;;  %v554_v6 = vpop.xlane.xlu0 %553  ;;  %1314 = vpow2.f32 %v663_v4  ;;  %v593_v42 = vsub.f32 0.0, %v1709_v60 }
 0x162   :  { %775 = vadd.xlane.f32.xlu1 %v754_v48  ;;  %v576_v11 = vsub.f32 %v1700_v47, %v554_v6  ;;  %v596_v6 = vsub.f32 0.0, %v1719_v7 }
 0x163   :  { %v609_v59 = vsel %vm1749_vm5, %v593_v42, 0.0 }
 0x164   :  { %v624_v20 = vsel %vm1641_vm13, %v576_v11, %v608_v19 }
 0x165   :  { %v640_v25 = vmin.f32 %v624_v20, 80.0 }
 0x167   :  { %v1965_v21 = vpop.eup %1314  ;;  %v665_v33 = vmul.f32 1.442695, %v640_v25 }
 0x168   :  { %v690_v29 = vsel %vm1799_vm7, %v1965_v21, 0.0  ;;  %v891_v52 = vsel %vm1824_vm10, %v1965_v21, 0.0  ;;  %v824_v53 = vsel %vm1781_vm4, %v1965_v21, 0.0  ;;  %v757_v54 = vsel %vm1791_vm6, %v1965_v21, 0.0 }
 0x169   :  { %844 = vadd.xlane.f32.xlu0 %v822_v61  ;;  %777 = vadd.xlane.f32.xlu2 %v755_v62  ;;  %v560_v23 = vpop.xlane.xlu0 %559  ;;  %v556_v34 = vpop.xlane.xlu1 %555  ;;  %1316 = vpow2.f32 %v665_v33 }
 0x16a   :  { %710 = vadd.xlane.f32.xlu1 %v688_v63  ;;  %v579_v27 = vsub.f32 %v1706_v56, %v560_v23  ;;  %v577_v48 = vsub.f32 %v1709_v60, %v556_v34  ;;  %v612_v23 = vsel %vm1749_vm5, %v596_v6, 0.0 }
 0x16c   :  { %v627_v41 = vsel %vm1641_vm13, %v579_v27, %v611_v39  ;;  %v625_v62 = vsel %vm1641_vm13, %v577_v48, %v609_v59  ;;  %v594_v27 = vsub.f32 0.0, %v1721_v9 }
 0x16d   :  { %v643_v45 = vmin.f32 %v627_v41, 80.0  ;;  %v641_v8 = vmin.f32 %v625_v62, 80.0 }
 0x16e   :  { %v610_v39 = vsel %vm1749_vm5, %v594_v27, 0.0  ;;  %v979_v27 = vadd.f32 1.0, %v1803_v50 }
 0x16f   :  { %v671_v61 = vmul.f32 1.442695, %v643_v45  ;;  %v1997_v63 = vpop.eup %1316  ;;  %v667_v20 = vmul.f32 1.442695, %v641_v8 }
 0x170   :  { %v892_v34 = vsel %vm1824_vm10, %v1997_v63, 0.0 }
 0x171   :  { %779 = vadd.xlane.f32.xlu0 %v756_v12  ;;  %712 = vadd.xlane.f32.xlu2 %v689_v13  ;;  %v562_v4 = vpop.xlane.xlu1 %561  ;;  %1318 = vpow2.f32 %v671_v61  ;;  %v825_v12 = vsel %vm1781_vm4, %v1997_v63, 0.0  ;;  %v758_v13 = vsel %vm1791_vm6, %v1997_v63, 0.0  ;;  %v558_v19 = vpop.xlane.xlu2 %557 }
 0x172   :  { %911 = vadd.xlane.f32.xlu1 %v889_v14  ;;  %v580_v11 = vsub.f32 %v1719_v7, %v562_v4  ;;  %v691_v14 = vsel %vm1799_vm7, %v1997_v63, 0.0  ;;  %1320 = vpow2.f32 %v667_v20 }
 0x174   :  { %v628_v30 = vsel %vm1641_vm13, %v580_v11, %v612_v23 }
 0x177   :  { %v2014_v25 = vpop.eup %1318 }
 0x178   :  { %v761_v33 = vsel %vm1791_vm6, %v2014_v25, 0.0  ;;  %v694_v61 = vsel %vm1799_vm7, %v2014_v25, 0.0  ;;  %v895_v23 = vsel %vm1824_vm10, %v2014_v25, 0.0 }
 0x179   :  { %714 = vadd.xlane.f32.xlu0 %v690_v29  ;;  %913 = vadd.xlane.f32.xlu2 %v890_v31  ;;  %v644_v29 = vmin.f32 %v628_v30, 80.0  ;;  %v578_v31 = vsub.f32 %v1721_v9, %v558_v19  ;;  %v564_v45 = vpop.xlane.xlu2 %563 }
 0x17a   :  { %846 = vadd.xlane.f32.xlu1 %v823_v32  ;;  %v828_v32 = vsel %vm1781_vm4, %v2014_v25, 0.0 }
 0x17b   :  { %v673_v41 = vmul.f32 1.442695, %v644_v29  ;;  %v626_v42 = vsel %vm1641_vm13, %v578_v31, %v610_v39  ;;  %v566_v48 = vpop.xlane.xlu0 %565 }
 0x17d   :  { %1322 = vpow2.f32 %v673_v41 }
 0x181   :  { %915 = vadd.xlane.f32.xlu0 %v891_v52  ;;  %848 = vadd.xlane.f32.xlu2 %v824_v53  ;;  %v2031_v52 = vpop.eup %1320  ;;  %v642_v53 = vmin.f32 %v626_v42, 80.0 }
 0x182   :  { %781 = vadd.xlane.f32.xlu1 %v757_v54  ;;  %v759_v54 = vsel %vm1791_vm6, %v2031_v52, 0.0  ;;  %v692_v59 = vsel %vm1799_vm7, %v2031_v52, 0.0  ;;  %v893_v20 = vsel %vm1824_vm10, %v2031_v52, 0.0 }
 0x183   :  { %v669_v62 = vmul.f32 1.442695, %v642_v53  ;;  %v2042_v8 = vpop.eup %1322 }
 0x184   :  { %v762_v19 = vsel %vm1791_vm6, %v2042_v8, 0.0 }
 0x185   :  { %1324 = vpow2.f32 %v669_v62  ;;  %v826_v62 = vsel %vm1781_vm4, %v2031_v52, 0.0 }
 0x186   :  { %1326 = vrcp.f32 %v979_v27 }
 0x189   :  { %850 = vadd.xlane.f32.xlu0 %v825_v12  ;;  %783 = vadd.xlane.f32.xlu2 %v758_v13  ;;  %v597_v12 = vsub.f32 0.0, %v1730_v16 }
 0x18a   :  { %716 = vadd.xlane.f32.xlu1 %v691_v14  ;;  %v581_v14 = vsub.f32 %v1730_v16, %v564_v45  ;;  %v598_v45 = vsub.f32 0.0, %v1735_v22 }
 0x18b   :  { %v613_v29 = vsel %vm1749_vm5, %v597_v12, 0.0 }
 0x18c   :  { %v629_v31 = vsel %vm1641_vm13, %v581_v14, %v613_v29 }
 0x18d   :  { %v645_v53 = vmin.f32 %v629_v31, 80.0 }
 0x191   :  { %856 = vadd.xlane.f32.xlu0 %v828_v32  ;;  %789 = vadd.xlane.f32.xlu2 %v761_v33 }
 0x192   :  { %917 = vadd.xlane.f32.xlu1 %v892_v34  ;;  %v2064_v34 = vpop.eup %1324 }
 0x193   :  { %v1327_v12 = vpop.eup %1326 }
 0x199   :  { %785 = vadd.xlane.f32.xlu0 %v759_v54  ;;  %718 = vadd.xlane.f32.xlu2 %v692_v59  ;;  %v582_v54 = vsub.f32 %v1735_v22, %v566_v48  ;;  %v693_v59 = vsel %vm1799_vm7, %v2064_v34, 0.0  ;;  %v980_v48 = vadd.f32 1.0, %v1828_v3 }
 0x19a   :  { %722 = vadd.xlane.f32.xlu1 %v694_v61  ;;  %v695_v61 = vsel %vm1799_vm7, %v2042_v8, 0.0 }
 0x19c   :  { %v766_v4 = vpop.xlane.xlu2 %765  ;;  %v833_v6 = vpop.xlane.xlu0 %832 }
 0x19d   :  { %v699_v11 = vpop.xlane.xlu1 %698 }
 0x19e   :  { %v730_v13 = vsel %vm679_vm3, %v699_v11, 1.0  ;;  %v614_v11 = vsel %vm1749_vm5, %v598_v45, 0.0 }
 0x19f   :  { %v797_v30 = vsel %vm1769_vm2, %v766_v4, %v730_v13  ;;  %v630_v13 = vsel %vm1641_vm13, %v582_v54, %v614_v11  ;;  %v981_v54 = vadd.f32 1.0, %v1845_v17 }
 0x1a0   :  { %v864_v39 = vsel %vm1763_vm9, %v833_v6, %v797_v30  ;;  %v675_v6 = vmul.f32 1.442695, %v645_v53  ;;  %v646_v31 = vmin.f32 %v630_v13, 80.0 }
 0x1a1   :  { %791 = vadd.xlane.f32.xlu0 %v762_v19  ;;  %919 = vadd.xlane.f32.xlu2 %v893_v20 }
 0x1a2   :  { %923 = vadd.xlane.f32.xlu1 %v895_v23 }
 0x1a4   :  { %v701_v32 = vpop.xlane.xlu2 %700  ;;  %v768_v33 = vpop.xlane.xlu0 %767 }
 0x1a5   :  { %v900_v41 = vpop.xlane.xlu1 %899  ;;  %v731_v4 = vsel %vm679_vm3, %v701_v32, 1.0  ;;  %v1011_v32 = vsel %vm1749_vm5, %v1327_v12, %v1645_v37  ;;  %v829_v37 = vsel %vm1781_vm4, %v2042_v8, 0.0 }
 0x1a6   :  { %v931_v42 = vsel %vm2433_vm11, %v900_v41, %v864_v39  ;;  %v798_v23 = vsel %vm1769_vm2, %v768_v33, %v731_v4  ;;  %v827_v33 = vsel %vm1781_vm4, %v2064_v34, 0.0  ;;  %vm2444_vm11 = vmmov %vm2438_vm0 }
 0x1a7   :  { %1328 = vrcp.f32 %v931_v42  ;;  %v677_v42 = vmul.f32 1.442695, %v646_v31 }
 0x1a8   :  { %1330 = vrcp.f32 %v980_v48 }
 0x1a9   :  { %720 = vadd.xlane.f32.xlu0 %v693_v59  ;;  %724 = vadd.xlane.f32.xlu2 %v695_v61  ;;  %1332 = vpow2.f32 %v675_v6 }
 0x1aa   :  { %852 = vadd.xlane.f32.xlu1 %v826_v62 }
 0x1ac   :  { %v902_v14 = vpop.xlane.xlu2 %901  ;;  %v703_v19 = vpop.xlane.xlu0 %702 }
 0x1ad   :  { %v1329_v20 = vpop.eup %1328  ;;  %v835_v30 = vpop.xlane.xlu1 %834  ;;  %v732_v62 = vsel %vm679_vm3, %v703_v19, 1.0 }
 0x1ae   :  { %v963_v27 = vmul.f32 %v1329_v20, %v1803_v50  ;;  %v865_v29 = vsel %vm1763_vm9, %v835_v30, %v798_v23  ;;  %v894_v50 = vsel %vm1824_vm10, %v2064_v34, 0.0  ;;  %v1331_v45 = vpop.eup %1330 }
 0x1af   :  { %v932_v39 = vsel %vm2434_vm12, %v902_v14, %v865_v29  ;;  %v2113_v61 = vpop.eup %1332  ;;  %v1012_v11 = vsel %vm1749_vm5, %v1331_v45, %v1651_v44  ;;  %v982_v45 = vadd.f32 1.0, %v1877_v55  ;;  %vm2445_vm12 = vmmov %vm2438_vm0 }
 0x1b0   :  { %v1027_v41 = vsel %vm1641_vm13, %v963_v27, %v1011_v32  ;;  %1334 = vrcp.f32 %v932_v39  ;;  %v696_v19 = vsel %vm1799_vm7, %v2113_v61, 0.0  ;;  %v830_v20 = vsel %vm1781_vm4, %v2113_v61, 0.0 }
 0x1b1   :  { %1043 = vst [vmem:[%s2410_s3] sm:$0xff] %v1027_v41  ;;  %921 = vadd.xlane.f32.xlu0 %v894_v50  ;;  %854 = vadd.xlane.f32.xlu2 %v827_v33  ;;  %1336 = vpow2.f32 %v677_v42  ;;  %v763_v42 = vsel %vm1791_vm6, %v2113_v61, 0.0 }
 0x1b2   :  { %858 = vadd.xlane.f32.xlu1 %v829_v37  ;;  %1338 = vrcp.f32 %v981_v54 }
 0x1b4   :  { %v837_v53 = vpop.xlane.xlu2 %836  ;;  %v904_v59 = vpop.xlane.xlu0 %903 }
 0x1b5   :  { %v770_v4 = vpop.xlane.xlu1 %769 }
 0x1b6   :  { %v1335_v48 = vpop.eup %1334  ;;  %v799_v6 = vsel %vm1769_vm2, %v770_v4, %v732_v62  ;;  %v897_v62 = vsel %vm1824_vm10, %v2113_v61, 0.0  ;;  %v896_v4 = vsel %vm1824_vm10, %v2042_v8, 0.0 }
 0x1b7   :  { %v964_v12 = vmul.f32 %v1335_v48, %v1828_v3  ;;  %v866_v13 = vsel %vm1763_vm9, %v837_v53, %v799_v6  ;;  %v760_v3 = vsel %vm1791_vm6, %v2064_v34, 0.0  ;;  %v2141_v27 = vpop.eup %1336 }
 0x1b8   :  { %v933_v14 = vsel %vm2435_vm14, %v904_v59, %v866_v13  ;;  %v1339_v31 = vpop.eup %1338  ;;  %v831_v50 = vsel %vm1781_vm4, %v2141_v27, 0.0  ;;  %v764_v33 = vsel %vm1791_vm6, %v2141_v27, 0.0  ;;  %v697_v48 = vsel %vm1799_vm7, %v2141_v27, 0.0  ;;  %vm2439_vm4 = vmmov %vm2438_vm0 }
 0x1b9   :  { %v1028_v44 = vsel %vm1641_vm13, %v964_v12, %v1012_v11  ;;  %1340 = vrcp.f32 %v933_v14  ;;  %726 = vadd.xlane.f32.xlu0 %v696_v19  ;;  %860 = vadd.xlane.f32.xlu2 %v830_v20  ;;  %v1013_v37 = vsel %vm1749_vm5, %v1339_v31, %v1657_v51  ;;  %v983_v11 = vadd.f32 1.0, %v1888_v0  ;;  %vm2440_vm6 = vmmov %vm2438_vm0 }
 0x1ba   :  { %1044 = vst [vmem:[%s2410_s3 + $0x8] sm:$0xff] %v1028_v44  ;;  %787 = vadd.xlane.f32.xlu1 %v760_v3  ;;  %1342 = vrcp.f32 %v982_v45  ;;  %vm2441_vm7 = vmmov %vm2438_vm0 }
 0x1bb   :  { %vm2446_vm14 = vmmov %vm2438_vm0 }
 0x1bc   :  { %v772_v23 = vpop.xlane.xlu2 %771  ;;  %v839_v30 = vpop.xlane.xlu0 %838 }
 0x1bd   :  { %v705_v29 = vpop.xlane.xlu1 %704 }
 0x1be   :  { %v733_v39 = vsel %vm679_vm3, %v705_v29, 1.0 }
 0x1bf   :  { %v1341_v32 = vpop.eup %1340  ;;  %v800_v43 = vsel %vm1769_vm2, %v772_v23, %v733_v39 }
 0x1c0   :  { %v965_v41 = vmul.f32 %v1341_v32, %v1845_v17  ;;  %v867_v46 = vsel %vm1763_vm9, %v839_v30, %v800_v43  ;;  %v1343_v12 = vpop.eup %1342 }
 0x1c1   :  { %862 = vadd.xlane.f32.xlu0 %v831_v50  ;;  %795 = vadd.xlane.f32.xlu2 %v764_v33  ;;  %v1014_v23 = vsel %vm1749_vm5, %v1343_v12, %v1663_v58  ;;  %v984_v58 = vadd.f32 1.0, %v1905_v15 }
 0x1c2   :  { %v1029_v17 = vsel %vm1641_vm13, %v965_v41, %v1013_v37  ;;  %793 = vadd.xlane.f32.xlu1 %v763_v42 }
 0x1c3   :  { %1045 = vst [vmem:[%s2410_s3 + $0x10] sm:$0xff] %v1029_v17 }
 0x1c4   :  { %v707_v51 = vpop.xlane.xlu2 %706  ;;  %v774_v53 = vpop.xlane.xlu0 %773 }
 0x1c5   :  { %v906_v54 = vpop.xlane.xlu1 %905  ;;  %v734_v6 = vsel %vm679_vm3, %v707_v51, 1.0 }
 0x1c6   :  { %v934_v59 = vsel %vm2436_vm15, %v906_v54, %v867_v46  ;;  %v801_v20 = vsel %vm1769_vm2, %v774_v53, %v734_v6  ;;  %v985_v6 = vadd.f32 1.0, %v1937_v57  ;;  %vm2447_vm15 = vmmov %vm2438_vm0 }
 0x1c7   :  { %1344 = vrcp.f32 %v934_v59 }
 0x1c8   :  { %1346 = vrcp.f32 %v983_v11 }
 0x1c9   :  { %927 = vadd.xlane.f32.xlu0 %v897_v62  ;;  %925 = vadd.xlane.f32.xlu2 %v896_v4 }
 0x1ca   :  { %728 = vadd.xlane.f32.xlu1 %v697_v48 }
 0x1cc   :  { %v908_v13 = vpop.xlane.xlu2 %907  ;;  %v709_v14 = vpop.xlane.xlu0 %708 }
 0x1cd   :  { %v1345_v19 = vpop.eup %1344  ;;  %v841_v44 = vpop.xlane.xlu1 %840  ;;  %v735_v41 = vsel %vm679_vm3, %v709_v14, 1.0 }
 0x1ce   :  { %v966_v3 = vmul.f32 %v1345_v19, %v1877_v55  ;;  %v868_v49 = vsel %vm1763_vm9, %v841_v44, %v801_v20  ;;  %v898_v55 = vsel %vm1824_vm10, %v2141_v27, 0.0  ;;  %v1347_v39 = vpop.eup %1346  ;;  %v986_v19 = vadd.f32 1.0, %v1948_v5  ;;  %vm2443_vm10 = vmmov %vm2438_vm0 }
 0x1cf   :  { %v935_v30 = vsel %vm2437_vm1, %v908_v13, %v868_v49  ;;  %v1015_v17 = vsel %vm1749_vm5, %v1347_v39, %v1669_v2  ;;  %v987_v39 = vadd.f32 1.0, %v1965_v21 }
 0x1d0   :  { %v1030_v29 = vsel %vm1641_vm13, %v966_v3, %v1014_v23  ;;  %1348 = vrcp.f32 %v935_v30 }
 0x1d1   :  { %1046 = vst [vmem:[%s2410_s3 + $0x18] sm:$0xff] %v1030_v29  ;;  %1350 = vrcp.f32 %v984_v58 }
 0x1d2   :  { %929 = vadd.xlane.f32.xlu1 %v898_v55 }
 0x1d4   :  { %v843_v31 = vpop.xlane.xlu2 %842  ;;  %v910_v32 = vpop.xlane.xlu0 %909 }
 0x1d5   :  { %v776_v50 = vpop.xlane.xlu1 %775 }
 0x1d6   :  { %v1349_v33 = vpop.eup %1348  ;;  %v802_v37 = vsel %vm1769_vm2, %v776_v50, %v735_v41 }
 0x1d7   :  { %v967_v42 = vmul.f32 %v1349_v33, %v1888_v0  ;;  %v869_v1 = vsel %vm1763_vm9, %v843_v31, %v802_v37  ;;  %v1351_v46 = vpop.eup %1350 }
 0x1d8   :  { %v936_v43 = vsel %vm2438_vm0, %v910_v32, %v869_v1  ;;  %v1016_v62 = vsel %vm1749_vm5, %v1351_v46, %v1675_v10 }
 0x1d9   :  { %v1031_v45 = vsel %vm1641_vm13, %v967_v42, %v1015_v17  ;;  %1352 = vrcp.f32 %v936_v43 }
 0x1da   :  { %1047 = vst [vmem:[%s2410_s3 + $0x20] sm:$0xff] %v1031_v45  ;;  %1354 = vrcp.f32 %v985_v6 }
 0x1dc   :  { %v778_v0 = vpop.xlane.xlu2 %777  ;;  %v845_v51 = vpop.xlane.xlu0 %844 }
 0x1dd   :  { %v711_v53 = vpop.xlane.xlu1 %710 }
 0x1de   :  { %v736_v2 = vsel %vm679_vm3, %v711_v53, 1.0 }
 0x1df   :  { %v1353_v54 = vpop.eup %1352  ;;  %v803_v48 = vsel %vm1769_vm2, %v778_v0, %v736_v2 }
 0x1e0   :  { %v968_v59 = vmul.f32 %v1353_v54, %v1905_v15  ;;  %v870_v15 = vsel %vm1763_vm9, %v845_v51, %v803_v48  ;;  %v1355_v20 = vpop.eup %1354  ;;  %v988_v48 = vadd.f32 1.0, %v1997_v63 }
 0x1e1   :  { %v1017_v31 = vsel %vm1749_vm5, %v1355_v20, %v1681_v18 }
 0x1e2   :  { %v1032_v4 = vsel %vm1641_vm13, %v968_v59, %v1016_v62 }
 0x1e3   :  { %1048 = vst [vmem:[%s2410_s3 + $0x28] sm:$0xff] %v1032_v4 }
 0x1e4   :  { %v713_v11 = vpop.xlane.xlu2 %712  ;;  %v780_v12 = vpop.xlane.xlu0 %779 }
 0x1e5   :  { %v912_v13 = vpop.xlane.xlu1 %911  ;;  %v737_v14 = vsel %vm679_vm3, %v713_v11, 1.0 }
 0x1e6   :  { %v937_v10 = vsel %vm2439_vm4, %v912_v13, %v870_v15  ;;  %v804_v23 = vsel %vm1769_vm2, %v780_v12, %v737_v14 }
 0x1e7   :  { %1356 = vrcp.f32 %v937_v10 }
 0x1e8   :  { %1358 = vrcp.f32 %v986_v19 }
 0x1ec   :  { %v914_v44 = vpop.xlane.xlu2 %913  ;;  %v715_v3 = vpop.xlane.xlu0 %714 }
 0x1ed   :  { %v1357_v49 = vpop.eup %1356  ;;  %v847_v30 = vpop.xlane.xlu1 %846  ;;  %v738_v18 = vsel %vm679_vm3, %v715_v3, 1.0 }
 0x1ee   :  { %v969_v29 = vmul.f32 %v1357_v49, %v1937_v57  ;;  %v871_v55 = vsel %vm1763_vm9, %v847_v30, %v804_v23  ;;  %v1359_v50 = vpop.eup %1358  ;;  %v991_v30 = vadd.f32 1.0, %v2014_v25 }
 0x1ef   :  { %v938_v58 = vsel %vm2440_vm6, %v914_v44, %v871_v55  ;;  %v1018_v43 = vsel %vm1749_vm5, %v1359_v50, %v1687_v26 }
 0x1f0   :  { %v1033_v32 = vsel %vm1641_vm13, %v969_v29, %v1017_v31  ;;  %1360 = vrcp.f32 %v938_v58 }
 0x1f1   :  { %1049 = vst [vmem:[%s2410_s3 + $0x30] sm:$0xff] %v1033_v32  ;;  %1362 = vrcp.f32 %v987_v39  ;;  %v989_v32 = vadd.f32 1.0, %v2031_v52 }
 0x1f4   :  { %v849_v57 = vpop.xlane.xlu2 %848  ;;  %v916_v41 = vpop.xlane.xlu0 %915 }
 0x1f5   :  { %v782_v33 = vpop.xlane.xlu1 %781 }
 0x1f6   :  { %v1361_v37 = vpop.eup %1360  ;;  %v805_v42 = vsel %vm1769_vm2, %v782_v33, %v738_v18 }
 0x1f7   :  { %v970_v1 = vmul.f32 %v1361_v37, %v1948_v5  ;;  %v872_v17 = vsel %vm1763_vm9, %v849_v57, %v805_v42  ;;  %v1363_v46 = vpop.eup %1362 }
 0x1f8   :  { %v939_v45 = vsel %vm2441_vm7, %v916_v41, %v872_v17  ;;  %v1019_v59 = vsel %vm1749_vm5, %v1363_v46, %v1693_v35 }
 0x1f9   :  { %v1034_v0 = vsel %vm1641_vm13, %v970_v1, %v1018_v43  ;;  %1364 = vrcp.f32 %v939_v45 }
 0x1fa   :  { %1050 = vst [vmem:[%s2410_s3 + $0x38] sm:$0xff] %v1034_v0  ;;  %1366 = vrcp.f32 %v988_v48 }
 0x1fc   :  { %v784_v5 = vpop.xlane.xlu2 %783  ;;  %v851_v51 = vpop.xlane.xlu0 %850 }
 0x1fd   :  { %v717_v53 = vpop.xlane.xlu1 %716 }
 0x1fe   :  { %v739_v26 = vsel %vm679_vm3, %v717_v53, 1.0 }
 0x1ff   :  { %v1365_v54 = vpop.eup %1364  ;;  %v806_v4 = vsel %vm1769_vm2, %v784_v5, %v739_v26  ;;  %v990_v26 = vadd.f32 1.0, %v2064_v34 }
 0x200   :  { %v971_v2 = vmul.f32 %v1365_v54, %v1965_v21  ;;  %v873_v21 = vsel %vm1763_vm9, %v851_v51, %v806_v4  ;;  %v1367_v15 = vpop.eup %1366 }
 0x201   :  { %v1020_v44 = vsel %vm1749_vm5, %v1367_v15, %v1700_v47 }
 0x202   :  { %v1035_v62 = vsel %vm1641_vm13, %v971_v2, %v1019_v59 }
 0x203   :  { %1051 = vst [vmem:[%s2410_s3 + $0x40] sm:$0xff] %v1035_v62 }
 0x204   :  { %v790_v6 = vpop.xlane.xlu2 %789  ;;  %v857_v11 = vpop.xlane.xlu0 %856 }
 0x205   :  { %v918_v12 = vpop.xlane.xlu1 %917 }
 0x206   :  { %v940_v35 = vsel %vm2442_vm8, %v918_v12, %v873_v21 }
 0x207   :  { %1368 = vrcp.f32 %v940_v35 }
 0x208   :  { %1370 = vrcp.f32 %v991_v30 }
 0x20c   :  { %v719_v13 = vpop.xlane.xlu2 %718  ;;  %v786_v10 = vpop.xlane.xlu0 %785 }
 0x20d   :  { %v1369_v14 = vpop.eup %1368  ;;  %v723_v19 = vpop.xlane.xlu1 %722  ;;  %v740_v58 = vsel %vm679_vm3, %v719_v13, 1.0 }
 0x20e   :  { %v972_v20 = vmul.f32 %v1369_v14, %v1997_v63  ;;  %v742_v3 = vsel %vm679_vm3, %v723_v19, 1.0  ;;  %v1371_v57 = vpop.eup %1370  ;;  %v807_v18 = vsel %vm1769_vm2, %v786_v10, %v740_v58  ;;  %v992_v10 = vadd.f32 1.0, %v2042_v8 }
 0x20f   :  { %v809_v23 = vsel %vm1769_vm2, %v790_v6, %v742_v3  ;;  %v1023_v1 = vsel %vm1749_vm5, %v1371_v57, %v1706_v56  ;;  %v994_v58 = vadd.f32 1.0, %v2141_v27 }
 0x210   :  { %v1036_v49 = vsel %vm1641_vm13, %v972_v20, %v1020_v44  ;;  %v876_v47 = vsel %vm1763_vm9, %v857_v11, %v809_v23  ;;  %v993_v20 = vadd.f32 1.0, %v2113_v61 }
 0x211   :  { %1052 = vst [vmem:[%s2410_s3 + $0x48] sm:$0xff] %v1036_v49 }
 0x214   :  { %v920_v63 = vpop.xlane.xlu2 %919  ;;  %v792_v29 = vpop.xlane.xlu0 %791 }
 0x215   :  { %v924_v55 = vpop.xlane.xlu1 %923 }
 0x216   :  { %v943_v31 = vsel %vm2443_vm10, %v924_v55, %v876_v47 }
 0x217   :  { %1372 = vrcp.f32 %v943_v31 }
 0x218   :  { %1374 = vrcp.f32 %v989_v32 }
 0x21c   :  { %v725_v39 = vpop.xlane.xlu2 %724  ;;  %v721_v41 = vpop.xlane.xlu0 %720 }
 0x21d   :  { %v1373_v50 = vpop.eup %1372  ;;  %v853_v33 = vpop.xlane.xlu1 %852  ;;  %v741_v59 = vsel %vm679_vm3, %v721_v41, 1.0  ;;  %v743_v35 = vsel %vm679_vm3, %v725_v39, 1.0 }
 0x21e   :  { %v975_v37 = vmul.f32 %v1373_v50, %v2014_v25  ;;  %v874_v42 = vsel %vm1763_vm9, %v853_v33, %v807_v18  ;;  %v1375_v0 = vpop.eup %1374 }
 0x21f   :  { %v941_v17 = vsel %vm2444_vm11, %v920_v63, %v874_v42  ;;  %v1021_v56 = vsel %vm1749_vm5, %v1375_v0, %v1709_v60 }
 0x220   :  { %v1039_v43 = vsel %vm1641_vm13, %v975_v37, %v1023_v1  ;;  %1376 = vrcp.f32 %v941_v17 }
 0x221   :  { %1055 = vst [vmem:[%s2410_s3 + $0x60] sm:$0xff] %v1039_v43  ;;  %1378 = vrcp.f32 %v990_v26 }
 0x224   :  { %v855_v25 = vpop.xlane.xlu2 %854  ;;  %v922_v45 = vpop.xlane.xlu0 %921 }
 0x225   :  { %v859_v5 = vpop.xlane.xlu1 %858 }
 0x226   :  { %v1377_v51 = vpop.eup %1376 }
 0x227   :  { %v973_v53 = vmul.f32 %v1377_v51, %v2031_v52  ;;  %v1379_v21 = vpop.eup %1378 }
 0x228   :  { %v1022_v14 = vsel %vm1749_vm5, %v1379_v21, %v1721_v9 }
 0x229   :  { %v1037_v46 = vsel %vm1641_vm13, %v973_v53, %v1021_v56 }
 0x22a   :  { %1053 = vst [vmem:[%s2410_s3 + $0x50] sm:$0xff] %v1037_v46 }
 0x22c   :  { %v861_v54 = vpop.xlane.xlu2 %860  ;;  %v727_v2 = vpop.xlane.xlu0 %726 }
 0x22d   :  { %v788_v62 = vpop.xlane.xlu1 %787  ;;  %v744_v13 = vsel %vm679_vm3, %v727_v2, 1.0 }
 0x22e   :  { %v808_v52 = vsel %vm1769_vm2, %v788_v62, %v741_v59 }
 0x22f   :  { %v875_v60 = vsel %vm1763_vm9, %v855_v25, %v808_v52 }
 0x230   :  { %v942_v4 = vsel %vm2445_vm12, %v922_v45, %v875_v60 }
 0x231   :  { %1380 = vrcp.f32 %v942_v4 }
 0x232   :  { %1382 = vrcp.f32 %v992_v10 }
 0x233   :  { %1384 = vrcp.f32 %v993_v20 }
 0x234   :  { %v796_v48 = vpop.xlane.xlu2 %795  ;;  %v863_v6 = vpop.xlane.xlu0 %862 }
 0x235   :  { %v794_v11 = vpop.xlane.xlu1 %793 }
 0x236   :  { %v811_v19 = vsel %vm1769_vm2, %v794_v11, %v744_v13 }
 0x237   :  { %v1381_v12 = vpop.eup %1380  ;;  %v878_v49 = vsel %vm1763_vm9, %v861_v54, %v811_v19 }
 0x238   :  { %v974_v15 = vmul.f32 %v1381_v12, %v2064_v34  ;;  %v810_v34 = vsel %vm1769_vm2, %v792_v29, %v743_v35  ;;  %v1383_v47 = vpop.eup %1382 }
 0x239   :  { %v877_v3 = vsel %vm1763_vm9, %v859_v5, %v810_v34  ;;  %v1385_v32 = vpop.eup %1384  ;;  %v1024_v33 = vsel %vm1749_vm5, %v1383_v47, %v1719_v7 }
 0x23a   :  { %v1038_v44 = vsel %vm1641_vm13, %v974_v15, %v1022_v14 }
 0x23b   :  { %1054 = vst [vmem:[%s2410_s3 + $0x58] sm:$0xff] %v1038_v44 }
 0x23c   :  { %v926_v9 = vpop.xlane.xlu2 %925  ;;  %v928_v23 = vpop.xlane.xlu0 %927 }
 0x23d   :  { %v944_v30 = vsel %vm2446_vm14, %v926_v9, %v877_v3  ;;  %v729_v63 = vpop.xlane.xlu1 %728  ;;  %v945_v29 = vsel %vm2447_vm15, %v928_v23, %v878_v49 }
 0x23e   :  { %1386 = vrcp.f32 %v944_v30  ;;  %v745_v55 = vsel %vm679_vm3, %v729_v63, 1.0 }
 0x23f   :  { %1388 = vrcp.f32 %v945_v29  ;;  %v812_v31 = vsel %vm1769_vm2, %v796_v48, %v745_v55  ;;  %vm2448_vm2 = vmmov %vm2438_vm0 }
 0x240   :  { %v879_v18 = vsel %vm1763_vm9, %v863_v6, %v812_v31  ;;  %1390 = vrcp.f32 %v994_v58 }
 0x244   :  { %v1387_v57 = vpop.eup %1386 }
 0x245   :  { %v1389_v39 = vpop.eup %1388  ;;  %v976_v41 = vmul.f32 %v1387_v57, %v2042_v8  ;;  %v930_v50 = vpop.xlane.xlu1 %929  ;;  %v1025_v8 = vsel %vm1749_vm5, %v1385_v32, %v1730_v16 }
 0x246   :  { %v977_v37 = vmul.f32 %v1389_v39, %v2113_v61  ;;  %v946_v40 = vsel %vm2448_vm2, %v930_v50, %v879_v18  ;;  %v1391_v28 = vpop.eup %1390 }
 0x247   :  { %v1040_v42 = vsel %vm1641_vm13, %v976_v41, %v1024_v33  ;;  %1392 = vrcp.f32 %v946_v40  ;;  %v1026_v16 = vsel %vm1749_vm5, %v1391_v28, %v1735_v22 }
 0x248   :  { %1056 = vst [vmem:[%s2410_s3 + $0x68] sm:$0xff] %v1040_v42  ;;  %v1041_v7 = vsel %vm1641_vm13, %v977_v37, %v1025_v8 }
 0x249   :  { %1057 = vst [vmem:[%s2410_s3 + $0x70] sm:$0xff] %v1041_v7 }
 0x24d   :  { %v1393_v38 = vpop.eup %1392 }
 0x24e   :  { %v978_v61 = vmul.f32 %v1393_v38, %v2141_v27 }
 0x250   :  { %v1042_v1 = vsel %vm1641_vm13, %v978_v61, %v1026_v16 }
 0x251   :  { %1058 = vst [vmem:[%s2410_s3 + $0x78] sm:$0xff] %v1042_v1 }

</bundles_post_ra>
